<compile_context>
chip_gen: v7x
topology: tpu7x:2x2x1
jax: 0.10.0
libtpu: 0.0.40
codegen_flags: <defaults>
</compile_context>

<pallas_src>
import jax
import jax.numpy as jnp
import numpy as np
from jax import lax
from jax.experimental import pallas as pl
from jax.experimental.pallas import tpu as pltpu

# ----------------------------- configuration --------------------------------
B = 2           # batch
CIN = 8         # inp
EXP = 16        # exp (inverted-bottleneck hidden channels)
COUT = 8        # out
STRIDE = 1      # stride == 1 -> `resnet` branch (residual shortcut active)
HEADS = 2       # heads of the mobile<->former bridges
DIM = 32        # former token dim
H = W = 8       # spatial
L = H * W
M_TOK = 6       # number of former tokens
F_HEADS = 2     # Former() internal heads (module default)
F_DH = 32       # Former() dim_head (module default)
F_INNER = F_HEADS * F_DH
MLP = 2 * DIM   # Former() mlp_dim = 2 * dim
D4 = DIM // 4
EPS = 1e-5
NEG = -1e30
RESIDUAL = (STRIDE == 1 and CIN == COUT)

# ----------------------------- packed-operand layout -------------------------
# Slab WROW: (DIM, WROW_COLS) -- all weights whose contraction dim is DIM.
C_QKV = 0
C_FW1 = C_QKV + 3 * F_INNER          # 192
C_M2FQ = C_FW1 + MLP                 # 256
C_F2MK = C_M2FQ + HEADS * CIN        # 272
C_DYWA = C_F2MK + HEADS * COUT       # 288
WROW_COLS = C_DYWA + 2 * D4          # 304

# Slab WCOL: (WCOL_ROWS, 32) -- weights with <=32 columns, stacked on rows.
WCOL_COLS = DIM                      # 32
R_FWO = 0
R_FW2 = R_FWO + F_INNER              # 64
R_M2FO = R_FW2 + MLP                 # 128
R_F2MV = R_M2FO + HEADS * CIN        # 144
R_DYWB = R_F2MV + HEADS * COUT       # 160
R_MW1 = R_DYWB + 8 * EXP             # 288
R_MDW = R_MW1 + EXP                  # 304
R_MW3 = R_MDW + EXP                  # 320
R_F2MO = R_MW3 + COUT                # 328
WCOL_ROWS = R_F2MO + COUT            # 336

# Slab BROW: (1, BROW_COLS) -- row-oriented biases / LN affine params.
L_M2FBQ = 0
L_M2FBO = L_M2FBQ + HEADS * CIN      # 16
L_LN1G = L_M2FBO + DIM               # 48
L_LN1B = L_LN1G + DIM                # 80
L_FBO = L_LN1B + DIM                 # 112
L_LN2G = L_FBO + DIM                 # 144
L_LN2B = L_LN2G + DIM                # 176
L_FB1 = L_LN2B + DIM                 # 208
L_FB2 = L_FB1 + MLP                  # 272
L_DYBA = L_FB2 + DIM                 # 304
L_F2MBK = L_DYBA + 2 * D4            # 320
BROW_COLS = L_F2MBK + HEADS * COUT   # 336

# Slab BCOL: (BCOL_ROWS, 1) -- column-oriented biases / BN shifts.
RC_DYBB = 0
RC_MT1 = RC_DYBB + 8 * EXP           # 128
RC_MT2 = RC_MT1 + EXP                # 144
RC_MT3 = RC_MT2 + EXP                # 160
RC_F2MBV = RC_MT3 + COUT             # 168
RC_F2MBO = RC_F2MBV + HEADS * COUT   # 184
BCOL_ROWS = RC_F2MBO + COUT          # 192

# Constant/mask slab: (CMASK_ROWS, B*L) -- precomputed at parameter-prep time.
def _align8(n):
    return ((n + 7) // 8) * 8

CM_BATCH = 0                               # (B*M, B*L) additive batch mask
CM_SA = _align8(CM_BATCH + B * M_TOK)      # (B*M, B*M) additive SA block mask
CM_SEL0 = _align8(CM_SA + B * M_TOK)       # batch-b lane selector at row CM_SEL0+8*b
CM_DW = CM_SEL0 + 8 * B                    # 9 depthwise border masks
CMASK_ROWS = _align8(CM_DW + 9)


# ----------------------------- in-kernel helpers -----------------------------
def _dot(a, b):
    return jnp.dot(a, b, preferred_element_type=jnp.float32)


def _dot_t(a, b):
    # contract the last dims of both operands (a @ b.T), MXU friendly.
    return lax.dot_general(a, b, (((1,), (1,)), ((), ())),
                           preferred_element_type=jnp.float32)


def _softmax_last(s):
    m = jnp.max(s, axis=-1, keepdims=True)
    e = jnp.exp(s - m)
    return e / jnp.sum(e, axis=-1, keepdims=True)


def _softmax_rows(s):
    m = jnp.max(s, axis=0, keepdims=True)
    e = jnp.exp(s - m)
    return e / jnp.sum(e, axis=0, keepdims=True)


def _layernorm(x, g, b):
    mu = jnp.mean(x, axis=-1, keepdims=True)
    var = jnp.mean((x - mu) ** 2, axis=-1, keepdims=True)
    return (x - mu) * lax.rsqrt(var + EPS) * g + b


def _sigmoid(x):
    # numerically stable sigmoid (tanh form, lowers to the EUP).
    return 0.5 * (jnp.tanh(0.5 * x) + 1.0)


def _dyrelu(y, th):
    # DyReLU (k=2) with theta block th = [da1; da2; db1; db2], shapes (4E, B*L).
    e = y.shape[0]
    a1 = 1.0 + th[0:e]
    a2 = th[e:2 * e]
    b1 = 0.5 * th[2 * e:3 * e]
    b2 = 0.5 * th[3 * e:4 * e]
    return jnp.maximum(y * a1 + b1, y * a2 + b2)


# ----------------------------- fused kernel ----------------------------------
def _base_block_kernel(x_ref, z_ref, wrow_ref, wcol_ref, brow_ref, bcol_ref,
                       cm_ref, xo_ref, zo_ref):
    bl = B * L
    bm = B * M_TOK

    x = x_ref[...]                       # (CIN, B*L) channel-major, batch in lanes
    z = z_ref[...]                       # (B*M, DIM) former tokens, batch in rows

    batch_mask = cm_ref[CM_BATCH:CM_BATCH + bm, :]     # (B*M, B*L) additive 0 / -1e30
    sa_mask = cm_ref[CM_SA:CM_SA + bm, 0:bm]           # (B*M, B*M) additive

    # ---- Mobile -> Former bridge (resnet2transformer) ------------------------
    q = (_dot(z, wrow_ref[:, C_M2FQ:C_M2FQ + HEADS * CIN])
         + brow_ref[:, L_M2FBQ:L_M2FBQ + HEADS * CIN])           # (B*M, heads*Cin)
    m2f_outs = []
    for hh in range(HEADS):
        qh = q[:, hh * CIN:(hh + 1) * CIN]                       # (B*M, Cin)
        s = _dot(qh, x) * (CIN ** -0.5) + batch_mask             # (B*M, B*L)
        a = _softmax_last(s)                                     # per-batch softmax
        m2f_outs.append(_dot_t(a, x))                            # (B*M, Cin)
    z_hid = (z
             + _dot(jnp.concatenate(m2f_outs, axis=1),
                    wcol_ref[R_M2FO:R_M2FO + HEADS * CIN, :])
             + brow_ref[:, L_M2FBO:L_M2FBO + DIM])

    # ---- Former: pre-norm MHSA + pre-norm MLP, residuals ----------------------
    zn = _layernorm(z_hid,
                    brow_ref[:, L_LN1G:L_LN1G + DIM],
                    brow_ref[:, L_LN1B:L_LN1B + DIM])
    qkv = _dot(zn, wrow_ref[:, C_QKV:C_QKV + 3 * F_INNER])       # (B*M, 3*inner)
    sa_outs = []
    for hh in range(F_HEADS):
        qh = qkv[:, hh * F_DH:(hh + 1) * F_DH]
        kh = qkv[:, F_INNER + hh * F_DH:F_INNER + (hh + 1) * F_DH]
        vh = qkv[:, 2 * F_INNER + hh * F_DH:2 * F_INNER + (hh + 1) * F_DH]
        s = _dot_t(qh, kh) * (F_DH ** -0.5) + sa_mask            # (B*M, B*M) block-diag
        sa_outs.append(_dot(_softmax_last(s), vh))               # (B*M, dh)
    z1 = (z_hid
          + _dot(jnp.concatenate(sa_outs, axis=1),
                 wcol_ref[R_FWO:R_FWO + F_INNER, :])
          + brow_ref[:, L_FBO:L_FBO + DIM])
    zn2 = _layernorm(z1,
                     brow_ref[:, L_LN2G:L_LN2G + DIM],
                     brow_ref[:, L_LN2B:L_LN2B + DIM])
    # TODO(synk): PyTorch nn.GELU() is exact-erf; tanh approximation used here.
    hdn = jax.nn.gelu(_dot(zn2, wrow_ref[:, C_FW1:C_FW1 + MLP])
                      + brow_ref[:, L_FB1:L_FB1 + MLP], approximate=True)
    z_out = (z1 + _dot(hdn, wcol_ref[R_FW2:R_FW2 + MLP, :])
             + brow_ref[:, L_FB2:L_FB2 + DIM])
    zo_ref[...] = z_out

    # ---- DyReLU coefficient MLPs (both MLPs + both batches fused) ------------
    # TODO(synk): DyReLU a/b init constants follow the original implementation's
    # (1+th, th, 0.5*th, 0.5*th) convention conditioned on former token 0.
    z0 = jnp.concatenate(
        [z_out[b * M_TOK:b * M_TOK + 1, :] for b in range(B)], axis=0)  # (B, D)
    t = jnp.maximum(_dot(z0, wrow_ref[:, C_DYWA:C_DYWA + 2 * D4])
                    + brow_ref[:, L_DYBA:L_DYBA + 2 * D4], 0.0)         # (B, 2*D4)
    theta = 2.0 * _sigmoid(
        _dot_t(wcol_ref[R_DYWB:R_DYWB + 8 * EXP, 0:2 * D4], t)
        + bcol_ref[RC_DYBB:RC_DYBB + 8 * EXP, :]) - 1.0                 # (8E, B)
    theta_map = theta[:, 0:1] * cm_ref[CM_SEL0:CM_SEL0 + 1, :]
    for b in range(1, B):
        theta_map = theta_map + (theta[:, b:b + 1] *
                                 cm_ref[CM_SEL0 + 8 * b:CM_SEL0 + 8 * b + 1, :])
    # theta_map: (8E, B*L); rows [0,4E) for DyReLU-1, [4E,8E) for DyReLU-2.

    # ---- Mobile inverted bottleneck (channel-major, BN folded into weights) --
    h1 = (_dot(wcol_ref[R_MW1:R_MW1 + EXP, 0:CIN], x)
          + bcol_ref[RC_MT1:RC_MT1 + EXP, :])                           # (E, B*L)
    h1 = _dyrelu(h1, theta_map[0:4 * EXP])

    # depthwise 3x3 (pad 1, stride 1): XLU lane rotates + precomputed border masks
    wdw = wcol_ref[R_MDW:R_MDW + EXP, 0:9]                              # (E, 9)
    acc = None
    kk = 0
    for di in (-1, 0, 1):
        for dj in (-1, 0, 1):
            off = di * W + dj
            if off == 0:
                tap = wdw[:, kk:kk + 1] * h1
            else:
                rolled = pltpu.roll(h1, shift=(-off) % bl, axis=1)
                tap = wdw[:, kk:kk + 1] * (
                    rolled * cm_ref[CM_DW + kk:CM_DW + kk + 1, :])
            acc = tap if acc is None else acc + tap
            kk += 1
    h2 = _dyrelu(acc + bcol_ref[RC_MT2:RC_MT2 + EXP, :],
                 theta_map[4 * EXP:8 * EXP])

    x_hid = (_dot(wcol_ref[R_MW3:R_MW3 + COUT, 0:EXP], h2)
             + bcol_ref[RC_MT3:RC_MT3 + COUT, :])                       # (Cout, B*L)
    if RESIDUAL:
        x_hid = x_hid + x

    # ---- Former -> Mobile bridge (transformer2resnet) -------------------------
    k_all = (_dot(z_out, wrow_ref[:, C_F2MK:C_F2MK + HEADS * COUT])
             + brow_ref[:, L_F2MBK:L_F2MBK + HEADS * COUT])             # (B*M, h*Cout)
    vT = (_dot_t(wcol_ref[R_F2MV:R_F2MV + HEADS * COUT, :], z_out)
          + bcol_ref[RC_F2MBV:RC_F2MBV + HEADS * COUT, :])              # (h*Cout, B*M)
    f2m_outs = []
    for hh in range(HEADS):
        kh = k_all[:, hh * COUT:(hh + 1) * COUT]                        # (B*M, Cout)
        sT = _dot(kh, x_hid) * (COUT ** -0.5) + batch_mask              # (B*M, B*L)
        aT = _softmax_rows(sT)                                          # softmax over tokens
        f2m_outs.append(_dot(vT[hh * COUT:(hh + 1) * COUT, :], aT))     # (Cout, B*L)
    proj = _dot(wcol_ref[R_F2MO:R_F2MO + COUT, 0:HEADS * COUT],
                jnp.concatenate(f2m_outs, axis=0))                      # (Cout, B*L)
    xo_ref[...] = x_hid + proj + bcol_ref[RC_F2MBO:RC_F2MBO + COUT, :]


# ----------------------------- wrapper ---------------------------------------
@jax.jit
def base_block(x_nchw, z, kp):
    bb, ci, hh, ww = x_nchw.shape
    ll = hh * ww
    _, mm, dd = z.shape
    # layout plumbing only: channel-major with batch folded into the lane axis.
    x_bl = x_nchw.transpose(1, 0, 2, 3).reshape(ci, bb * ll)   # (CIN, B*L)
    z_all = z.reshape(bb * mm, dd)                             # (B*M, D)

    xo, zo = pl.pallas_call(
        _base_block_kernel,
        out_shape=(jax.ShapeDtypeStruct((COUT, bb * ll), jnp.float32),
                   jax.ShapeDtypeStruct((bb * mm, dd), jnp.float32)),
    )(x_bl, z_all, kp["wrow"], kp["wcol"], kp["brow"], kp["bcol"], kp["cmask"])

    x_out = xo.reshape(COUT, bb, hh, ww).transpose(1, 0, 2, 3)
    z_out = zo.reshape(bb, mm, dd)
    return [x_out, z_out]


# ----------------------------- parameters ------------------------------------
def init_params(key):
    ks = iter(jax.random.split(key, 64))

    def nrm(shape, s=0.05):
        return (s * jax.random.normal(next(ks), shape)).astype(jnp.float32)

    p = {}
    # resnet2transformer
    p["m2f_wq"] = nrm((DIM, HEADS * CIN)); p["m2f_bq"] = nrm((1, HEADS * CIN))
    p["m2f_wo"] = nrm((HEADS * CIN, DIM)); p["m2f_bo"] = nrm((1, DIM))
    # transformer
    p["f_ln1_g"] = jnp.ones((1, DIM), jnp.float32)
    p["f_ln1_b"] = jnp.zeros((1, DIM), jnp.float32)
    p["f_wq"] = nrm((DIM, F_INNER)); p["f_wk"] = nrm((DIM, F_INNER))
    p["f_wv"] = nrm((DIM, F_INNER))
    p["f_wo"] = nrm((F_INNER, DIM)); p["f_bo"] = nrm((1, DIM))
    p["f_ln2_g"] = jnp.ones((1, DIM), jnp.float32)
    p["f_ln2_b"] = jnp.zeros((1, DIM), jnp.float32)
    p["f_w1"] = nrm((DIM, MLP)); p["f_b1"] = nrm((1, MLP))
    p["f_w2"] = nrm((MLP, DIM)); p["f_b2"] = nrm((1, DIM))
    # resnet (Mobile); BatchNorm folded to eval-mode per-channel scale/shift
    p["m_w1"] = nrm((CIN, EXP))
    p["m_s1"] = 1.0 + nrm((1, EXP), 0.1); p["m_t1"] = nrm((1, EXP), 0.05)
    p["m_wdw"] = nrm((3, 3, EXP), 0.1)
    p["m_s2"] = 1.0 + nrm((1, EXP), 0.1); p["m_t2"] = nrm((1, EXP), 0.05)
    p["m_w3"] = nrm((EXP, COUT))
    p["m_s3"] = 1.0 + nrm((1, COUT), 0.1); p["m_t3"] = nrm((1, COUT), 0.05)
    # DyReLU conditioning MLPs
    p["dy1_wa"] = nrm((DIM, D4)); p["dy1_ba"] = nrm((D4,))
    p["dy1_wb"] = nrm((D4, 4 * EXP)); p["dy1_bb"] = nrm((4 * EXP,))
    p["dy2_wa"] = nrm((DIM, D4)); p["dy2_ba"] = nrm((D4,))
    p["dy2_wb"] = nrm((D4, 4 * EXP)); p["dy2_bb"] = nrm((4 * EXP,))
    # transformer2resnet
    p["f2m_wk"] = nrm((DIM, HEADS * COUT)); p["f2m_bk"] = nrm((1, HEADS * COUT))
    p["f2m_wv"] = nrm((DIM, HEADS * COUT)); p["f2m_bv"] = nrm((1, HEADS * COUT))
    p["f2m_wo"] = nrm((HEADS * COUT, COUT)); p["f2m_bo"] = nrm((1, COUT))
    return p


def _make_const_slab():
    bl = B * L
    bm = B * M_TOK
    cm = np.zeros((CMASK_ROWS, bl), np.float32)
    lane_b = np.arange(bl) // L
    row_b = np.arange(bm) // M_TOK
    cm[CM_BATCH:CM_BATCH + bm, :] = np.where(
        row_b[:, None] == lane_b[None, :], 0.0, NEG)
    cm[CM_SA:CM_SA + bm, :bm] = np.where(
        row_b[:, None] == row_b[None, :], 0.0, NEG)
    for b in range(B):
        cm[CM_SEL0 + 8 * b, :] = (lane_b == b).astype(np.float32)
    pos = np.arange(bl) % L
    rr, cc = pos // W, pos % W
    kk = 0
    for di in (-1, 0, 1):
        for dj in (-1, 0, 1):
            cm[CM_DW + kk, :] = (((rr + di) >= 0) & ((rr + di) < H) &
                                 ((cc + dj) >= 0) & ((cc + dj) < W)
                                 ).astype(np.float32)
            kk += 1
    return jnp.asarray(cm)


def prepare_params(p):
    """One-time repack into the fused kernel's packed slabs (BN scales folded)."""
    def pad_cols(a):
        r, c = a.shape
        return jnp.pad(a, ((0, 0), (0, WCOL_COLS - c)))

    # ---- WROW: (DIM, 304) ----
    wrow = jnp.concatenate([
        jnp.concatenate([p["f_wq"], p["f_wk"], p["f_wv"]], axis=1),  # qkv (32,192)
        p["f_w1"],                                                   # (32,64)
        p["m2f_wq"],                                                 # (32,16)
        p["f2m_wk"],                                                 # (32,16)
        jnp.concatenate([p["dy1_wa"], p["dy2_wa"]], axis=1),         # (32,16)
    ], axis=1)

    # ---- WCOL: (336, 32) ----
    dy_wbt_bd = jnp.zeros((8 * EXP, 2 * D4), jnp.float32)
    dy_wbt_bd = dy_wbt_bd.at[:4 * EXP, :D4].set(p["dy1_wb"].T)
    dy_wbt_bd = dy_wbt_bd.at[4 * EXP:, D4:].set(p["dy2_wb"].T)
    m_w1s = p["m_w1"].T * p["m_s1"].reshape(-1, 1)                   # (E, CIN)
    m_wdws = p["m_wdw"].reshape(9, EXP).T * p["m_s2"].reshape(-1, 1)  # (E, 9)
    m_w3s = p["m_w3"].T * p["m_s3"].reshape(-1, 1)                   # (COUT, E)
    wcol = jnp.concatenate([
        p["f_wo"],                 # (64,32)
        p["f_w2"],                 # (64,32)
        p["m2f_wo"],               # (16,32)
        p["f2m_wv"].T,             # (16,32)
        pad_cols(dy_wbt_bd),       # (128,32)
        pad_cols(m_w1s),           # (16,32)
        pad_cols(m_wdws),          # (16,32)
        pad_cols(m_w3s),           # (8,32)
        pad_cols(p["f2m_wo"].T),   # (8,32)
    ], axis=0)

    # ---- BROW: (1, 336) ----
    brow = jnp.concatenate([
        p["m2f_bq"], p["m2f_bo"],
        p["f_ln1_g"], p["f_ln1_b"], p["f_bo"],
        p["f_ln2_g"], p["f_ln2_b"],
        p["f_b1"], p["f_b2"],
        jnp.concatenate([p["dy1_ba"].reshape(1, -1),
                         p["dy2_ba"].reshape(1, -1)], axis=1),
        p["f2m_bk"],
    ], axis=1)

    # ---- BCOL: (192, 1) ----
    bcol = jnp.concatenate([
        p["dy1_bb"].reshape(-1, 1), p["dy2_bb"].reshape(-1, 1),
        p["m_t1"].reshape(-1, 1), p["m_t2"].reshape(-1, 1),
        p["m_t3"].reshape(-1, 1),
        p["f2m_bv"].reshape(-1, 1), p["f2m_bo"].reshape(-1, 1),
    ], axis=0)

    assert wrow.shape == (DIM, WROW_COLS)
    assert wcol.shape == (WCOL_ROWS, WCOL_COLS)
    assert brow.shape == (1, BROW_COLS)
    assert bcol.shape == (BCOL_ROWS, 1)
    return dict(wrow=wrow, wcol=wcol, brow=brow, bcol=bcol,
                cmask=_make_const_slab())


# ----------------------------- main -------------------------------------------
if __name__ == "__main__":
    key = jax.random.PRNGKey(0)
    kx, kz, kparam = jax.random.split(key, 3)
    x = jax.random.normal(kx, (B, CIN, H, W), jnp.float32)   # NCHW like PyTorch
    z = jax.random.normal(kz, (B, M_TOK, DIM), jnp.float32)  # former tokens
    params = init_params(kparam)
    kparams = prepare_params(params)                         # packed once

    x_out, z_out = base_block(x, z, kparams)
    jax.block_until_ready(x_out)
    jax.block_until_ready(z_out)

    assert x_out.shape == (B, COUT, H, W)
    assert z_out.shape == (B, M_TOK, DIM)
    assert bool(jnp.isfinite(x_out).all()) and bool(jnp.isfinite(z_out).all())
    print("KERNEL_OK")
</pallas_src>

<mosaic_0001>
module attributes {stable_mosaic.version = 11 : i64} {
  func.func @_base_block_kernel(%arg0: memref<8x128xf32, #tpu.memory_space<vmem>>, %arg1: memref<12x32xf32, #tpu.memory_space<vmem>>, %arg2: memref<32x304xf32, #tpu.memory_space<vmem>>, %arg3: memref<336x32xf32, #tpu.memory_space<vmem>>, %arg4: memref<1x336xf32, #tpu.memory_space<vmem>>, %arg5: memref<192x1xf32, #tpu.memory_space<vmem>>, %arg6: memref<64x128xf32, #tpu.memory_space<vmem>>, %arg7: memref<8x128xf32, #tpu.memory_space<vmem>>, %arg8: memref<12x32xf32, #tpu.memory_space<vmem>>) attributes {dimension_semantics = [], scalar_prefetch = 0 : i64, scratch_operands = 0 : i64, tpu.core_type = #tpu.core_type<tc>} {
    %c0 = arith.constant 0 : index
    %c0_0 = arith.constant 0 : index
    %0 = vector.load %arg0[%c0, %c0_0] : memref<8x128xf32, #tpu.memory_space<vmem>>, vector<8x128xf32>
    %c0_1 = arith.constant 0 : index
    %c0_2 = arith.constant 0 : index
    %1 = vector.load %arg1[%c0_1, %c0_2] : memref<12x32xf32, #tpu.memory_space<vmem>>, vector<12x32xf32>
    %c0_3 = arith.constant 0 : index
    %c0_4 = arith.constant 0 : index
    %2 = vector.load %arg6[%c0_3, %c0_4] : memref<64x128xf32, #tpu.memory_space<vmem>>, vector<12x128xf32>
    %c16 = arith.constant 16 : index
    %c0_5 = arith.constant 0 : index
    %3 = vector.load %arg6[%c16, %c0_5] : memref<64x128xf32, #tpu.memory_space<vmem>>, vector<12x12xf32>
    %c0_6 = arith.constant 0 : index
    %c256 = arith.constant 256 : index
    %4 = vector.load %arg2[%c0_6, %c256] : memref<32x304xf32, #tpu.memory_space<vmem>>, vector<32x16xf32>
    %cst = arith.constant dense<0.000000e+00> : vector<12x16xf32>
    %5 = tpu.matmul %1, %4, %cst {dimension_numbers = #tpu.dot_dimension_numbers<[1], [0], [0], [1], [0, 0, 1, 1], [], []>} : vector<12x32xf32>, vector<32x16xf32>, vector<12x16xf32> -> vector<12x16xf32>
    %c0_7 = arith.constant 0 : index
    %c0_8 = arith.constant 0 : index
    %6 = vector.load %arg4[%c0_7, %c0_8] : memref<1x336xf32, #tpu.memory_space<vmem>>, vector<1x16xf32>
    %7 = vector.broadcast %6 : vector<1x16xf32> to vector<12x16xf32>
    %8 = arith.addf %5, %7 : vector<12x16xf32>
    %9 = vector.extract_strided_slice %8 {offsets = [0, 0], sizes = [12, 8], strides = [1, 1]} : vector<12x16xf32> to vector<12x8xf32>
    %cst_9 = arith.constant dense<0.000000e+00> : vector<12x128xf32>
    %10 = tpu.matmul %9, %0, %cst_9 {dimension_numbers = #tpu.dot_dimension_numbers<[1], [0], [0], [1], [0, 0, 1, 1], [], []>} : vector<12x8xf32>, vector<8x128xf32>, vector<12x128xf32> -> vector<12x128xf32>
    %cst_10 = arith.constant 0.353553385 : f32
    %11 = vector.broadcast %cst_10 : f32 to vector<12x128xf32>
    %12 = arith.mulf %10, %11 : vector<12x128xf32>
    %13 = arith.addf %12, %2 : vector<12x128xf32>
    %cst_11 = arith.constant dense<0xFF800000> : vector<12xf32>
    %14 = vector.multi_reduction <maximumf>, %13, %cst_11 [1] : vector<12x128xf32> to vector<12xf32>
    %15 = vector.shape_cast %14 : vector<12xf32> to vector<12x1xf32>
    %16 = vector.broadcast %15 : vector<12x1xf32> to vector<12x128xf32>
    %17 = arith.subf %13, %16 : vector<12x128xf32>
    %18 = math.exp %17 : vector<12x128xf32>
    %cst_12 = arith.constant dense<0.000000e+00> : vector<12xf32>
    %19 = vector.multi_reduction <add>, %18, %cst_12 [1] : vector<12x128xf32> to vector<12xf32>
    %20 = vector.shape_cast %19 : vector<12xf32> to vector<12x1xf32>
    %21 = vector.broadcast %20 : vector<12x1xf32> to vector<12x128xf32>
    %22 = arith.divf %18, %21 : vector<12x128xf32>
    %cst_13 = arith.constant dense<0.000000e+00> : vector<12x8xf32>
    %23 = tpu.matmul %22, %0, %cst_13 {dimension_numbers = #tpu.dot_dimension_numbers<[1], [1], [0], [0], [0, 0, 1, 0], [], []>} : vector<12x128xf32>, vector<8x128xf32>, vector<12x8xf32> -> vector<12x8xf32>
    %24 = vector.extract_strided_slice %8 {offsets = [0, 8], sizes = [12, 8], strides = [1, 1]} : vector<12x16xf32> to vector<12x8xf32>
    %cst_14 = arith.constant dense<0.000000e+00> : vector<12x128xf32>
    %25 = tpu.matmul %24, %0, %cst_14 {dimension_numbers = #tpu.dot_dimension_numbers<[1], [0], [0], [1], [0, 0, 1, 1], [], []>} : vector<12x8xf32>, vector<8x128xf32>, vector<12x128xf32> -> vector<12x128xf32>
    %cst_15 = arith.constant 0.353553385 : f32
    %26 = vector.broadcast %cst_15 : f32 to vector<12x128xf32>
    %27 = arith.mulf %25, %26 : vector<12x128xf32>
    %28 = arith.addf %27, %2 : vector<12x128xf32>
    %cst_16 = arith.constant dense<0xFF800000> : vector<12xf32>
    %29 = vector.multi_reduction <maximumf>, %28, %cst_16 [1] : vector<12x128xf32> to vector<12xf32>
    %30 = vector.shape_cast %29 : vector<12xf32> to vector<12x1xf32>
    %31 = vector.broadcast %30 : vector<12x1xf32> to vector<12x128xf32>
    %32 = arith.subf %28, %31 : vector<12x128xf32>
    %33 = math.exp %32 : vector<12x128xf32>
    %cst_17 = arith.constant dense<0.000000e+00> : vector<12xf32>
    %34 = vector.multi_reduction <add>, %33, %cst_17 [1] : vector<12x128xf32> to vector<12xf32>
    %35 = vector.shape_cast %34 : vector<12xf32> to vector<12x1xf32>
    %36 = vector.broadcast %35 : vector<12x1xf32> to vector<12x128xf32>
    %37 = arith.divf %33, %36 : vector<12x128xf32>
    %cst_18 = arith.constant dense<0.000000e+00> : vector<12x8xf32>
    %38 = tpu.matmul %37, %0, %cst_18 {dimension_numbers = #tpu.dot_dimension_numbers<[1], [1], [0], [0], [0, 0, 1, 0], [], []>} : vector<12x128xf32>, vector<8x128xf32>, vector<12x8xf32> -> vector<12x8xf32>
    %39 = tpu.concatenate %23, %38 in 1 : vector<12x8xf32>, vector<12x8xf32> -> vector<12x16xf32>
    %c128 = arith.constant 128 : index
    %c0_19 = arith.constant 0 : index
    %40 = vector.load %arg3[%c128, %c0_19] : memref<336x32xf32, #tpu.memory_space<vmem>>, vector<16x32xf32>
    %cst_20 = arith.constant dense<0.000000e+00> : vector<12x32xf32>
    %41 = tpu.matmul %39, %40, %cst_20 {dimension_numbers = #tpu.dot_dimension_numbers<[1], [0], [0], [1], [0, 0, 1, 1], [], []>} : vector<12x16xf32>, vector<16x32xf32>, vector<12x32xf32> -> vector<12x32xf32>
    %42 = arith.addf %1, %41 : vector<12x32xf32>
    %c0_21 = arith.constant 0 : index
    %c16_22 = arith.constant 16 : index
    %43 = vector.load %arg4[%c0_21, %c16_22] : memref<1x336xf32, #tpu.memory_space<vmem>>, vector<1x32xf32>
    %44 = vector.broadcast %43 : vector<1x32xf32> to vector<12x32xf32>
    %45 = arith.addf %42, %44 : vector<12x32xf32>
    %c0_23 = arith.constant 0 : index
    %c48 = arith.constant 48 : index
    %46 = vector.load %arg4[%c0_23, %c48] : memref<1x336xf32, #tpu.memory_space<vmem>>, vector<1x32xf32>
    %c0_24 = arith.constant 0 : index
    %c80 = arith.constant 80 : index
    %47 = vector.load %arg4[%c0_24, %c80] : memref<1x336xf32, #tpu.memory_space<vmem>>, vector<1x32xf32>
    %cst_25 = arith.constant dense<0.000000e+00> : vector<12xf32>
    %48 = vector.multi_reduction <add>, %45, %cst_25 [1] : vector<12x32xf32> to vector<12xf32>
    %49 = vector.shape_cast %48 : vector<12xf32> to vector<12x1xf32>
    %cst_26 = arith.constant 3.200000e+01 : f32
    %50 = vector.broadcast %cst_26 : f32 to vector<12x1xf32>
    %51 = arith.divf %49, %50 : vector<12x1xf32>
    %52 = vector.broadcast %51 : vector<12x1xf32> to vector<12x32xf32>
    %53 = arith.subf %45, %52 : vector<12x32xf32>
    %54 = arith.mulf %53, %53 : vector<12x32xf32>
    %cst_27 = arith.constant dense<0.000000e+00> : vector<12xf32>
    %55 = vector.multi_reduction <add>, %54, %cst_27 [1] : vector<12x32xf32> to vector<12xf32>
    %56 = vector.shape_cast %55 : vector<12xf32> to vector<12x1xf32>
    %cst_28 = arith.constant 3.200000e+01 : f32
    %57 = vector.broadcast %cst_28 : f32 to vector<12x1xf32>
    %58 = arith.divf %56, %57 : vector<12x1xf32>
    %59 = vector.broadcast %51 : vector<12x1xf32> to vector<12x32xf32>
    %60 = arith.subf %45, %59 : vector<12x32xf32>
    %cst_29 = arith.constant 9.99999974E-6 : f32
    %61 = vector.broadcast %cst_29 : f32 to vector<12x1xf32>
    %62 = arith.addf %58, %61 : vector<12x1xf32>
    %63 = math.rsqrt %62 : vector<12x1xf32>
    %64 = vector.broadcast %63 : vector<12x1xf32> to vector<12x32xf32>
    %65 = arith.mulf %60, %64 : vector<12x32xf32>
    %66 = vector.broadcast %46 : vector<1x32xf32> to vector<12x32xf32>
    %67 = arith.mulf %65, %66 : vector<12x32xf32>
    %68 = vector.broadcast %47 : vector<1x32xf32> to vector<12x32xf32>
    %69 = arith.addf %67, %68 : vector<12x32xf32>
    %c0_30 = arith.constant 0 : index
    %c0_31 = arith.constant 0 : index
    %70 = vector.load %arg2[%c0_30, %c0_31] : memref<32x304xf32, #tpu.memory_space<vmem>>, vector<32x192xf32>
    %cst_32 = arith.constant dense<0.000000e+00> : vector<12x192xf32>
    %71 = tpu.matmul %69, %70, %cst_32 {dimension_numbers = #tpu.dot_dimension_numbers<[1], [0], [0], [1], [0, 0, 1, 1], [], []>} : vector<12x32xf32>, vector<32x192xf32>, vector<12x192xf32> -> vector<12x192xf32>
    %72 = vector.extract_strided_slice %71 {offsets = [0, 0], sizes = [12, 32], strides = [1, 1]} : vector<12x192xf32> to vector<12x32xf32>
    %73 = vector.extract_strided_slice %71 {offsets = [0, 64], sizes = [12, 32], strides = [1, 1]} : vector<12x192xf32> to vector<12x32xf32>
    %74 = vector.extract_strided_slice %71 {offsets = [0, 128], sizes = [12, 32], strides = [1, 1]} : vector<12x192xf32> to vector<12x32xf32>
    %cst_33 = arith.constant dense<0.000000e+00> : vector<12x12xf32>
    %75 = tpu.matmul %72, %73, %cst_33 {dimension_numbers = #tpu.dot_dimension_numbers<[1], [1], [0], [0], [0, 0, 1, 0], [], []>} : vector<12x32xf32>, vector<12x32xf32>, vector<12x12xf32> -> vector<12x12xf32>
    %cst_34 = arith.constant 0.176776692 : f32
    %76 = vector.broadcast %cst_34 : f32 to vector<12x12xf32>
    %77 = arith.mulf %75, %76 : vector<12x12xf32>
    %78 = arith.addf %77, %3 : vector<12x12xf32>
    %cst_35 = arith.constant dense<0xFF800000> : vector<12xf32>
    %79 = vector.multi_reduction <maximumf>, %78, %cst_35 [1] : vector<12x12xf32> to vector<12xf32>
    %80 = vector.shape_cast %79 : vector<12xf32> to vector<12x1xf32>
    %81 = vector.broadcast %80 : vector<12x1xf32> to vector<12x12xf32>
    %82 = arith.subf %78, %81 : vector<12x12xf32>
    %83 = math.exp %82 : vector<12x12xf32>
    %cst_36 = arith.constant dense<0.000000e+00> : vector<12xf32>
    %84 = vector.multi_reduction <add>, %83, %cst_36 [1] : vector<12x12xf32> to vector<12xf32>
    %85 = vector.shape_cast %84 : vector<12xf32> to vector<12x1xf32>
    %86 = vector.broadcast %85 : vector<12x1xf32> to vector<12x12xf32>
    %87 = arith.divf %83, %86 : vector<12x12xf32>
    %cst_37 = arith.constant dense<0.000000e+00> : vector<12x32xf32>
    %88 = tpu.matmul %87, %74, %cst_37 {dimension_numbers = #tpu.dot_dimension_numbers<[1], [0], [0], [1], [0, 0, 1, 1], [], []>} : vector<12x12xf32>, vector<12x32xf32>, vector<12x32xf32> -> vector<12x32xf32>
    %89 = vector.extract_strided_slice %71 {offsets = [0, 32], sizes = [12, 32], strides = [1, 1]} : vector<12x192xf32> to vector<12x32xf32>
    %90 = vector.extract_strided_slice %71 {offsets = [0, 96], sizes = [12, 32], strides = [1, 1]} : vector<12x192xf32> to vector<12x32xf32>
    %91 = vector.extract_strided_slice %71 {offsets = [0, 160], sizes = [12, 32], strides = [1, 1]} : vector<12x192xf32> to vector<12x32xf32>
    %cst_38 = arith.constant dense<0.000000e+00> : vector<12x12xf32>
    %92 = tpu.matmul %89, %90, %cst_38 {dimension_numbers = #tpu.dot_dimension_numbers<[1], [1], [0], [0], [0, 0, 1, 0], [], []>} : vector<12x32xf32>, vector<12x32xf32>, vector<12x12xf32> -> vector<12x12xf32>
    %cst_39 = arith.constant 0.176776692 : f32
    %93 = vector.broadcast %cst_39 : f32 to vector<12x12xf32>
    %94 = arith.mulf %92, %93 : vector<12x12xf32>
    %95 = arith.addf %94, %3 : vector<12x12xf32>
    %cst_40 = arith.constant dense<0xFF800000> : vector<12xf32>
    %96 = vector.multi_reduction <maximumf>, %95, %cst_40 [1] : vector<12x12xf32> to vector<12xf32>
    %97 = vector.shape_cast %96 : vector<12xf32> to vector<12x1xf32>
    %98 = vector.broadcast %97 : vector<12x1xf32> to vector<12x12xf32>
    %99 = arith.subf %95, %98 : vector<12x12xf32>
    %100 = math.exp %99 : vector<12x12xf32>
    %cst_41 = arith.constant dense<0.000000e+00> : vector<12xf32>
    %101 = vector.multi_reduction <add>, %100, %cst_41 [1] : vector<12x12xf32> to vector<12xf32>
    %102 = vector.shape_cast %101 : vector<12xf32> to vector<12x1xf32>
    %103 = vector.broadcast %102 : vector<12x1xf32> to vector<12x12xf32>
    %104 = arith.divf %100, %103 : vector<12x12xf32>
    %cst_42 = arith.constant dense<0.000000e+00> : vector<12x32xf32>
    %105 = tpu.matmul %104, %91, %cst_42 {dimension_numbers = #tpu.dot_dimension_numbers<[1], [0], [0], [1], [0, 0, 1, 1], [], []>} : vector<12x12xf32>, vector<12x32xf32>, vector<12x32xf32> -> vector<12x32xf32>
    %106 = tpu.concatenate %88, %105 in 1 : vector<12x32xf32>, vector<12x32xf32> -> vector<12x64xf32>
    %c0_43 = arith.constant 0 : index
    %c0_44 = arith.constant 0 : index
    %107 = vector.load %arg3[%c0_43, %c0_44] : memref<336x32xf32, #tpu.memory_space<vmem>>, vector<64x32xf32>
    %cst_45 = arith.constant dense<0.000000e+00> : vector<12x32xf32>
    %108 = tpu.matmul %106, %107, %cst_45 {dimension_numbers = #tpu.dot_dimension_numbers<[1], [0], [0], [1], [0, 0, 1, 1], [], []>} : vector<12x64xf32>, vector<64x32xf32>, vector<12x32xf32> -> vector<12x32xf32>
    %109 = arith.addf %45, %108 : vector<12x32xf32>
    %c0_46 = arith.constant 0 : index
    %c112 = arith.constant 112 : index
    %110 = vector.load %arg4[%c0_46, %c112] : memref<1x336xf32, #tpu.memory_space<vmem>>, vector<1x32xf32>
    %111 = vector.broadcast %110 : vector<1x32xf32> to vector<12x32xf32>
    %112 = arith.addf %109, %111 : vector<12x32xf32>
    %c0_47 = arith.constant 0 : index
    %c144 = arith.constant 144 : index
    %113 = vector.load %arg4[%c0_47, %c144] : memref<1x336xf32, #tpu.memory_space<vmem>>, vector<1x32xf32>
    %c0_48 = arith.constant 0 : index
    %c176 = arith.constant 176 : index
    %114 = vector.load %arg4[%c0_48, %c176] : memref<1x336xf32, #tpu.memory_space<vmem>>, vector<1x32xf32>
    %cst_49 = arith.constant dense<0.000000e+00> : vector<12xf32>
    %115 = vector.multi_reduction <add>, %112, %cst_49 [1] : vector<12x32xf32> to vector<12xf32>
    %116 = vector.shape_cast %115 : vector<12xf32> to vector<12x1xf32>
    %cst_50 = arith.constant 3.200000e+01 : f32
    %117 = vector.broadcast %cst_50 : f32 to vector<12x1xf32>
    %118 = arith.divf %116, %117 : vector<12x1xf32>
    %119 = vector.broadcast %118 : vector<12x1xf32> to vector<12x32xf32>
    %120 = arith.subf %112, %119 : vector<12x32xf32>
    %121 = arith.mulf %120, %120 : vector<12x32xf32>
    %cst_51 = arith.constant dense<0.000000e+00> : vector<12xf32>
    %122 = vector.multi_reduction <add>, %121, %cst_51 [1] : vector<12x32xf32> to vector<12xf32>
    %123 = vector.shape_cast %122 : vector<12xf32> to vector<12x1xf32>
    %cst_52 = arith.constant 3.200000e+01 : f32
    %124 = vector.broadcast %cst_52 : f32 to vector<12x1xf32>
    %125 = arith.divf %123, %124 : vector<12x1xf32>
    %126 = vector.broadcast %118 : vector<12x1xf32> to vector<12x32xf32>
    %127 = arith.subf %112, %126 : vector<12x32xf32>
    %cst_53 = arith.constant 9.99999974E-6 : f32
    %128 = vector.broadcast %cst_53 : f32 to vector<12x1xf32>
    %129 = arith.addf %125, %128 : vector<12x1xf32>
    %130 = math.rsqrt %129 : vector<12x1xf32>
    %131 = vector.broadcast %130 : vector<12x1xf32> to vector<12x32xf32>
    %132 = arith.mulf %127, %131 : vector<12x32xf32>
    %133 = vector.broadcast %113 : vector<1x32xf32> to vector<12x32xf32>
    %134 = arith.mulf %132, %133 : vector<12x32xf32>
    %135 = vector.broadcast %114 : vector<1x32xf32> to vector<12x32xf32>
    %136 = arith.addf %134, %135 : vector<12x32xf32>
    %c0_54 = arith.constant 0 : index
    %c192 = arith.constant 192 : index
    %137 = vector.load %arg2[%c0_54, %c192] : memref<32x304xf32, #tpu.memory_space<vmem>>, vector<32x64xf32>
    %cst_55 = arith.constant dense<0.000000e+00> : vector<12x64xf32>
    %138 = tpu.matmul %136, %137, %cst_55 {dimension_numbers = #tpu.dot_dimension_numbers<[1], [0], [0], [1], [0, 0, 1, 1], [], []>} : vector<12x32xf32>, vector<32x64xf32>, vector<12x64xf32> -> vector<12x64xf32>
    %c0_56 = arith.constant 0 : index
    %c208 = arith.constant 208 : index
    %139 = vector.load %arg4[%c0_56, %c208] : memref<1x336xf32, #tpu.memory_space<vmem>>, vector<1x64xf32>
    %140 = vector.broadcast %139 : vector<1x64xf32> to vector<12x64xf32>
    %141 = arith.addf %138, %140 : vector<12x64xf32>
    %142 = arith.mulf %141, %141 : vector<12x64xf32>
    %143 = arith.mulf %141, %142 : vector<12x64xf32>
    %cst_57 = arith.constant 4.471500e-02 : f32
    %144 = vector.broadcast %cst_57 : f32 to vector<12x64xf32>
    %145 = arith.mulf %144, %143 : vector<12x64xf32>
    %146 = arith.addf %141, %145 : vector<12x64xf32>
    %cst_58 = arith.constant 0.797884583 : f32
    %147 = vector.broadcast %cst_58 : f32 to vector<12x64xf32>
    %148 = arith.mulf %147, %146 : vector<12x64xf32>
    %149 = math.tanh %148 : vector<12x64xf32>
    %cst_59 = arith.constant 1.000000e+00 : f32
    %150 = vector.broadcast %cst_59 : f32 to vector<12x64xf32>
    %151 = arith.addf %150, %149 : vector<12x64xf32>
    %cst_60 = arith.constant 5.000000e-01 : f32
    %152 = vector.broadcast %cst_60 : f32 to vector<12x64xf32>
    %153 = arith.mulf %152, %151 : vector<12x64xf32>
    %154 = arith.mulf %141, %153 : vector<12x64xf32>
    %c64 = arith.constant 64 : index
    %c0_61 = arith.constant 0 : index
    %155 = vector.load %arg3[%c64, %c0_61] : memref<336x32xf32, #tpu.memory_space<vmem>>, vector<64x32xf32>
    %cst_62 = arith.constant dense<0.000000e+00> : vector<12x32xf32>
    %156 = tpu.matmul %154, %155, %cst_62 {dimension_numbers = #tpu.dot_dimension_numbers<[1], [0], [0], [1], [0, 0, 1, 1], [], []>} : vector<12x64xf32>, vector<64x32xf32>, vector<12x32xf32> -> vector<12x32xf32>
    %157 = arith.addf %112, %156 : vector<12x32xf32>
    %c0_63 = arith.constant 0 : index
    %c272 = arith.constant 272 : index
    %158 = vector.load %arg4[%c0_63, %c272] : memref<1x336xf32, #tpu.memory_space<vmem>>, vector<1x32xf32>
    %159 = vector.broadcast %158 : vector<1x32xf32> to vector<12x32xf32>
    %160 = arith.addf %157, %159 : vector<12x32xf32>
    %c0_64 = arith.constant 0 : index
    %c0_65 = arith.constant 0 : index
    %161 = vector.load %arg8[%c0_64, %c0_65] : memref<12x32xf32, #tpu.memory_space<vmem>>, vector<12x32xf32>
    tpu.vector_store %arg8[%c0_64, %c0_65], %160 {strides = array<i32>} : memref<12x32xf32, #tpu.memory_space<vmem>>, vector<12x32xf32>,
    %162 = vector.extract_strided_slice %160 {offsets = [0, 0], sizes = [1, 32], strides = [1, 1]} : vector<12x32xf32> to vector<1x32xf32>
    %163 = vector.extract_strided_slice %160 {offsets = [6, 0], sizes = [1, 32], strides = [1, 1]} : vector<12x32xf32> to vector<1x32xf32>
    %164 = tpu.concatenate %162, %163 in 0 : vector<1x32xf32>, vector<1x32xf32> -> vector<2x32xf32>
    %c0_66 = arith.constant 0 : index
    %c288 = arith.constant 288 : index
    %165 = vector.load %arg2[%c0_66, %c288] : memref<32x304xf32, #tpu.memory_space<vmem>>, vector<32x16xf32>
    %cst_67 = arith.constant dense<0.000000e+00> : vector<2x16xf32>
    %166 = tpu.matmul %164, %165, %cst_67 {dimension_numbers = #tpu.dot_dimension_numbers<[1], [0], [0], [1], [0, 0, 1, 1], [], []>} : vector<2x32xf32>, vector<32x16xf32>, vector<2x16xf32> -> vector<2x16xf32>
    %c0_68 = arith.constant 0 : index
    %c304 = arith.constant 304 : index
    %167 = vector.load %arg4[%c0_68, %c304] : memref<1x336xf32, #tpu.memory_space<vmem>>, vector<1x16xf32>
    %168 = vector.broadcast %167 : vector<1x16xf32> to vector<2x16xf32>
    %169 = arith.addf %166, %168 : vector<2x16xf32>
    %cst_69 = arith.constant 0.000000e+00 : f32
    %170 = vector.broadcast %cst_69 : f32 to vector<2x16xf32>
    %171 = arith.maximumf %169, %170 : vector<2x16xf32>
    %c160 = arith.constant 160 : index
    %c0_70 = arith.constant 0 : index
    %172 = vector.load %arg3[%c160, %c0_70] : memref<336x32xf32, #tpu.memory_space<vmem>>, vector<128x16xf32>
    %cst_71 = arith.constant dense<0.000000e+00> : vector<128x2xf32>
    %173 = tpu.matmul %172, %171, %cst_71 {dimension_numbers = #tpu.dot_dimension_numbers<[1], [1], [0], [0], [0, 0, 1, 0], [], []>} : vector<128x16xf32>, vector<2x16xf32>, vector<128x2xf32> -> vector<128x2xf32>
    %c0_72 = arith.constant 0 : index
    %c0_73 = arith.constant 0 : index
    %174 = vector.load %arg5[%c0_72, %c0_73] : memref<192x1xf32, #tpu.memory_space<vmem>>, vector<128x1xf32>
    %175 = vector.broadcast %174 : vector<128x1xf32> to vector<128x2xf32>
    %176 = arith.addf %173, %175 : vector<128x2xf32>
    %cst_74 = arith.constant 5.000000e-01 : f32
    %177 = vector.broadcast %cst_74 : f32 to vector<128x2xf32>
    %178 = arith.mulf %177, %176 : vector<128x2xf32>
    %179 = math.tanh %178 : vector<128x2xf32>
    %cst_75 = arith.constant 1.000000e+00 : f32
    %180 = vector.broadcast %cst_75 : f32 to vector<128x2xf32>
    %181 = arith.addf %179, %180 : vector<128x2xf32>
    %cst_76 = arith.constant 5.000000e-01 : f32
    %182 = vector.broadcast %cst_76 : f32 to vector<128x2xf32>
    %183 = arith.mulf %182, %181 : vector<128x2xf32>
    %cst_77 = arith.constant 2.000000e+00 : f32
    %184 = vector.broadcast %cst_77 : f32 to vector<128x2xf32>
    %185 = arith.mulf %184, %183 : vector<128x2xf32>
    %cst_78 = arith.constant 1.000000e+00 : f32
    %186 = vector.broadcast %cst_78 : f32 to vector<128x2xf32>
    %187 = arith.subf %185, %186 : vector<128x2xf32>
    %188 = vector.extract_strided_slice %187 {offsets = [0, 0], sizes = [128, 1], strides = [1, 1]} : vector<128x2xf32> to vector<128x1xf32>
    %c32 = arith.constant 32 : index
    %c0_79 = arith.constant 0 : index
    %189 = vector.load %arg6[%c32, %c0_79] : memref<64x128xf32, #tpu.memory_space<vmem>>, vector<1x128xf32>
    %190 = vector.broadcast %188 : vector<128x1xf32> to vector<128x128xf32>
    %191 = vector.broadcast %189 : vector<1x128xf32> to vector<128x128xf32>
    %192 = arith.mulf %190, %191 : vector<128x128xf32>
    %193 = vector.extract_strided_slice %187 {offsets = [0, 1], sizes = [128, 1], strides = [1, 1]} : vector<128x2xf32> to vector<128x1xf32>
    %c40 = arith.constant 40 : index
    %c0_80 = arith.constant 0 : index
    %194 = vector.load %arg6[%c40, %c0_80] : memref<64x128xf32, #tpu.memory_space<vmem>>, vector<1x128xf32>
    %195 = vector.broadcast %193 : vector<128x1xf32> to vector<128x128xf32>
    %196 = vector.broadcast %194 : vector<1x128xf32> to vector<128x128xf32>
    %197 = arith.mulf %195, %196 : vector<128x128xf32>
    %198 = arith.addf %192, %197 : vector<128x128xf32>
    %c288_81 = arith.constant 288 : index
    %c0_82 = arith.constant 0 : index
    %199 = vector.load %arg3[%c288_81, %c0_82] : memref<336x32xf32, #tpu.memory_space<vmem>>, vector<16x8xf32>
    %cst_83 = arith.constant dense<0.000000e+00> : vector<16x128xf32>
    %200 = tpu.matmul %199, %0, %cst_83 {dimension_numbers = #tpu.dot_dimension_numbers<[1], [0], [0], [1], [0, 0, 1, 1], [], []>} : vector<16x8xf32>, vector<8x128xf32>, vector<16x128xf32> -> vector<16x128xf32>
    %c128_84 = arith.constant 128 : index
    %c0_85 = arith.constant 0 : index
    %201 = vector.load %arg5[%c128_84, %c0_85] : memref<192x1xf32, #tpu.memory_space<vmem>>, vector<16x1xf32>
    %202 = vector.broadcast %201 : vector<16x1xf32> to vector<16x128xf32>
    %203 = arith.addf %200, %202 : vector<16x128xf32>
    %204 = vector.extract_strided_slice %198 {offsets = [0, 0], sizes = [64, 128], strides = [1, 1]} : vector<128x128xf32> to vector<64x128xf32>
    %205 = vector.extract_strided_slice %204 {offsets = [0, 0], sizes = [16, 128], strides = [1, 1]} : vector<64x128xf32> to vector<16x128xf32>
    %cst_86 = arith.constant 1.000000e+00 : f32
    %206 = vector.broadcast %cst_86 : f32 to vector<16x128xf32>
    %207 = arith.addf %206, %205 : vector<16x128xf32>
    %208 = vector.extract_strided_slice %204 {offsets = [16, 0], sizes = [16, 128], strides = [1, 1]} : vector<64x128xf32> to vector<16x128xf32>
    %209 = vector.extract_strided_slice %204 {offsets = [32, 0], sizes = [16, 128], strides = [1, 1]} : vector<64x128xf32> to vector<16x128xf32>
    %cst_87 = arith.constant 5.000000e-01 : f32
    %210 = vector.broadcast %cst_87 : f32 to vector<16x128xf32>
    %211 = arith.mulf %210, %209 : vector<16x128xf32>
    %212 = vector.extract_strided_slice %204 {offsets = [48, 0], sizes = [16, 128], strides = [1, 1]} : vector<64x128xf32> to vector<16x128xf32>
    %cst_88 = arith.constant 5.000000e-01 : f32
    %213 = vector.broadcast %cst_88 : f32 to vector<16x128xf32>
    %214 = arith.mulf %213, %212 : vector<16x128xf32>
    %215 = arith.mulf %203, %207 : vector<16x128xf32>
    %216 = arith.addf %215, %211 : vector<16x128xf32>
    %217 = arith.mulf %203, %208 : vector<16x128xf32>
    %218 = arith.addf %217, %214 : vector<16x128xf32>
    %219 = arith.maximumf %216, %218 : vector<16x128xf32>
    %c304_89 = arith.constant 304 : index
    %c0_90 = arith.constant 0 : index
    %220 = vector.load %arg3[%c304_89, %c0_90] : memref<336x32xf32, #tpu.memory_space<vmem>>, vector<16x9xf32>
    %c9_i32 = arith.constant 9 : i32
    %221 = tpu.dynamic_rotate %219 by %c9_i32 dim 1 : vector<16x128xf32>, i32 -> vector<16x128xf32>
    %222 = vector.extract_strided_slice %220 {offsets = [0, 0], sizes = [16, 1], strides = [1, 1]} : vector<16x9xf32> to vector<16x1xf32>
    %c48_91 = arith.constant 48 : index
    %c0_92 = arith.constant 0 : index
    %223 = vector.load %arg6[%c48_91, %c0_92] : memref<64x128xf32, #tpu.memory_space<vmem>>, vector<1x128xf32>
    %224 = vector.broadcast %223 : vector<1x128xf32> to vector<16x128xf32>
    %225 = arith.mulf %221, %224 : vector<16x128xf32>
    %226 = vector.broadcast %222 : vector<16x1xf32> to vector<16x128xf32>
    %227 = arith.mulf %226, %225 : vector<16x128xf32>
    %c8_i32 = arith.constant 8 : i32
    %228 = tpu.dynamic_rotate %219 by %c8_i32 dim 1 : vector<16x128xf32>, i32 -> vector<16x128xf32>
    %229 = vector.extract_strided_slice %220 {offsets = [0, 1], sizes = [16, 1], strides = [1, 1]} : vector<16x9xf32> to vector<16x1xf32>
    %c49 = arith.constant 49 : index
    %c0_93 = arith.constant 0 : index
    %230 = vector.load %arg6[%c49, %c0_93] : memref<64x128xf32, #tpu.memory_space<vmem>>, vector<1x128xf32>
    %231 = vector.broadcast %230 : vector<1x128xf32> to vector<16x128xf32>
    %232 = arith.mulf %228, %231 : vector<16x128xf32>
    %233 = vector.broadcast %229 : vector<16x1xf32> to vector<16x128xf32>
    %234 = arith.mulf %233, %232 : vector<16x128xf32>
    %235 = arith.addf %227, %234 : vector<16x128xf32>
    %c7_i32 = arith.constant 7 : i32
    %236 = tpu.dynamic_rotate %219 by %c7_i32 dim 1 : vector<16x128xf32>, i32 -> vector<16x128xf32>
    %237 = vector.extract_strided_slice %220 {offsets = [0, 2], sizes = [16, 1], strides = [1, 1]} : vector<16x9xf32> to vector<16x1xf32>
    %c50 = arith.constant 50 : index
    %c0_94 = arith.constant 0 : index
    %238 = vector.load %arg6[%c50, %c0_94] : memref<64x128xf32, #tpu.memory_space<vmem>>, vector<1x128xf32>
    %239 = vector.broadcast %238 : vector<1x128xf32> to vector<16x128xf32>
    %240 = arith.mulf %236, %239 : vector<16x128xf32>
    %241 = vector.broadcast %237 : vector<16x1xf32> to vector<16x128xf32>
    %242 = arith.mulf %241, %240 : vector<16x128xf32>
    %243 = arith.addf %235, %242 : vector<16x128xf32>
    %c1_i32 = arith.constant 1 : i32
    %244 = tpu.dynamic_rotate %219 by %c1_i32 dim 1 : vector<16x128xf32>, i32 -> vector<16x128xf32>
    %245 = vector.extract_strided_slice %220 {offsets = [0, 3], sizes = [16, 1], strides = [1, 1]} : vector<16x9xf32> to vector<16x1xf32>
    %c51 = arith.constant 51 : index
    %c0_95 = arith.constant 0 : index
    %246 = vector.load %arg6[%c51, %c0_95] : memref<64x128xf32, #tpu.memory_space<vmem>>, vector<1x128xf32>
    %247 = vector.broadcast %246 : vector<1x128xf32> to vector<16x128xf32>
    %248 = arith.mulf %244, %247 : vector<16x128xf32>
    %249 = vector.broadcast %245 : vector<16x1xf32> to vector<16x128xf32>
    %250 = arith.mulf %249, %248 : vector<16x128xf32>
    %251 = arith.addf %243, %250 : vector<16x128xf32>
    %252 = vector.extract_strided_slice %220 {offsets = [0, 4], sizes = [16, 1], strides = [1, 1]} : vector<16x9xf32> to vector<16x1xf32>
    %253 = vector.broadcast %252 : vector<16x1xf32> to vector<16x128xf32>
    %254 = arith.mulf %253, %219 : vector<16x128xf32>
    %255 = arith.addf %251, %254 : vector<16x128xf32>
    %c127_i32 = arith.constant 127 : i32
    %256 = tpu.dynamic_rotate %219 by %c127_i32 dim 1 : vector<16x128xf32>, i32 -> vector<16x128xf32>
    %257 = vector.extract_strided_slice %220 {offsets = [0, 5], sizes = [16, 1], strides = [1, 1]} : vector<16x9xf32> to vector<16x1xf32>
    %c53 = arith.constant 53 : index
    %c0_96 = arith.constant 0 : index
    %258 = vector.load %arg6[%c53, %c0_96] : memref<64x128xf32, #tpu.memory_space<vmem>>, vector<1x128xf32>
    %259 = vector.broadcast %258 : vector<1x128xf32> to vector<16x128xf32>
    %260 = arith.mulf %256, %259 : vector<16x128xf32>
    %261 = vector.broadcast %257 : vector<16x1xf32> to vector<16x128xf32>
    %262 = arith.mulf %261, %260 : vector<16x128xf32>
    %263 = arith.addf %255, %262 : vector<16x128xf32>
    %c121_i32 = arith.constant 121 : i32
    %264 = tpu.dynamic_rotate %219 by %c121_i32 dim 1 : vector<16x128xf32>, i32 -> vector<16x128xf32>
    %265 = vector.extract_strided_slice %220 {offsets = [0, 6], sizes = [16, 1], strides = [1, 1]} : vector<16x9xf32> to vector<16x1xf32>
    %c54 = arith.constant 54 : index
    %c0_97 = arith.constant 0 : index
    %266 = vector.load %arg6[%c54, %c0_97] : memref<64x128xf32, #tpu.memory_space<vmem>>, vector<1x128xf32>
    %267 = vector.broadcast %266 : vector<1x128xf32> to vector<16x128xf32>
    %268 = arith.mulf %264, %267 : vector<16x128xf32>
    %269 = vector.broadcast %265 : vector<16x1xf32> to vector<16x128xf32>
    %270 = arith.mulf %269, %268 : vector<16x128xf32>
    %271 = arith.addf %263, %270 : vector<16x128xf32>
    %c120_i32 = arith.constant 120 : i32
    %272 = tpu.dynamic_rotate %219 by %c120_i32 dim 1 : vector<16x128xf32>, i32 -> vector<16x128xf32>
    %273 = vector.extract_strided_slice %220 {offsets = [0, 7], sizes = [16, 1], strides = [1, 1]} : vector<16x9xf32> to vector<16x1xf32>
    %c55 = arith.constant 55 : index
    %c0_98 = arith.constant 0 : index
    %274 = vector.load %arg6[%c55, %c0_98] : memref<64x128xf32, #tpu.memory_space<vmem>>, vector<1x128xf32>
    %275 = vector.broadcast %274 : vector<1x128xf32> to vector<16x128xf32>
    %276 = arith.mulf %272, %275 : vector<16x128xf32>
    %277 = vector.broadcast %273 : vector<16x1xf32> to vector<16x128xf32>
    %278 = arith.mulf %277, %276 : vector<16x128xf32>
    %279 = arith.addf %271, %278 : vector<16x128xf32>
    %c119_i32 = arith.constant 119 : i32
    %280 = tpu.dynamic_rotate %219 by %c119_i32 dim 1 : vector<16x128xf32>, i32 -> vector<16x128xf32>
    %281 = vector.extract_strided_slice %220 {offsets = [0, 8], sizes = [16, 1], strides = [1, 1]} : vector<16x9xf32> to vector<16x1xf32>
    %c56 = arith.constant 56 : index
    %c0_99 = arith.constant 0 : index
    %282 = vector.load %arg6[%c56, %c0_99] : memref<64x128xf32, #tpu.memory_space<vmem>>, vector<1x128xf32>
    %283 = vector.broadcast %282 : vector<1x128xf32> to vector<16x128xf32>
    %284 = arith.mulf %280, %283 : vector<16x128xf32>
    %285 = vector.broadcast %281 : vector<16x1xf32> to vector<16x128xf32>
    %286 = arith.mulf %285, %284 : vector<16x128xf32>
    %287 = arith.addf %279, %286 : vector<16x128xf32>
    %c144_100 = arith.constant 144 : index
    %c0_101 = arith.constant 0 : index
    %288 = vector.load %arg5[%c144_100, %c0_101] : memref<192x1xf32, #tpu.memory_space<vmem>>, vector<16x1xf32>
    %289 = vector.broadcast %288 : vector<16x1xf32> to vector<16x128xf32>
    %290 = arith.addf %287, %289 : vector<16x128xf32>
    %291 = vector.extract_strided_slice %198 {offsets = [64, 0], sizes = [64, 128], strides = [1, 1]} : vector<128x128xf32> to vector<64x128xf32>
    %292 = vector.extract_strided_slice %291 {offsets = [0, 0], sizes = [16, 128], strides = [1, 1]} : vector<64x128xf32> to vector<16x128xf32>
    %cst_102 = arith.constant 1.000000e+00 : f32
    %293 = vector.broadcast %cst_102 : f32 to vector<16x128xf32>
    %294 = arith.addf %293, %292 : vector<16x128xf32>
    %295 = vector.extract_strided_slice %291 {offsets = [16, 0], sizes = [16, 128], strides = [1, 1]} : vector<64x128xf32> to vector<16x128xf32>
    %296 = vector.extract_strided_slice %291 {offsets = [32, 0], sizes = [16, 128], strides = [1, 1]} : vector<64x128xf32> to vector<16x128xf32>
    %cst_103 = arith.constant 5.000000e-01 : f32
    %297 = vector.broadcast %cst_103 : f32 to vector<16x128xf32>
    %298 = arith.mulf %297, %296 : vector<16x128xf32>
    %299 = vector.extract_strided_slice %291 {offsets = [48, 0], sizes = [16, 128], strides = [1, 1]} : vector<64x128xf32> to vector<16x128xf32>
    %cst_104 = arith.constant 5.000000e-01 : f32
    %300 = vector.broadcast %cst_104 : f32 to vector<16x128xf32>
    %301 = arith.mulf %300, %299 : vector<16x128xf32>
    %302 = arith.mulf %290, %294 : vector<16x128xf32>
    %303 = arith.addf %302, %298 : vector<16x128xf32>
    %304 = arith.mulf %290, %295 : vector<16x128xf32>
    %305 = arith.addf %304, %301 : vector<16x128xf32>
    %306 = arith.maximumf %303, %305 : vector<16x128xf32>
    %c320 = arith.constant 320 : index
    %c0_105 = arith.constant 0 : index
    %307 = vector.load %arg3[%c320, %c0_105] : memref<336x32xf32, #tpu.memory_space<vmem>>, vector<8x16xf32>
    %cst_106 = arith.constant dense<0.000000e+00> : vector<8x128xf32>
    %308 = tpu.matmul %307, %306, %cst_106 {dimension_numbers = #tpu.dot_dimension_numbers<[1], [0], [0], [1], [0, 0, 1, 1], [], []>} : vector<8x16xf32>, vector<16x128xf32>, vector<8x128xf32> -> vector<8x128xf32>
    %c160_107 = arith.constant 160 : index
    %c0_108 = arith.constant 0 : index
    %309 = vector.load %arg5[%c160_107, %c0_108] : memref<192x1xf32, #tpu.memory_space<vmem>>, vector<8x1xf32>
    %310 = vector.broadcast %309 : vector<8x1xf32> to vector<8x128xf32>
    %311 = arith.addf %308, %310 : vector<8x128xf32>
    %312 = arith.addf %311, %0 : vector<8x128xf32>
    %c0_109 = arith.constant 0 : index
    %c272_110 = arith.constant 272 : index
    %313 = vector.load %arg2[%c0_109, %c272_110] : memref<32x304xf32, #tpu.memory_space<vmem>>, vector<32x16xf32>
    %cst_111 = arith.constant dense<0.000000e+00> : vector<12x16xf32>
    %314 = tpu.matmul %160, %313, %cst_111 {dimension_numbers = #tpu.dot_dimension_numbers<[1], [0], [0], [1], [0, 0, 1, 1], [], []>} : vector<12x32xf32>, vector<32x16xf32>, vector<12x16xf32> -> vector<12x16xf32>
    %c0_112 = arith.constant 0 : index
    %c320_113 = arith.constant 320 : index
    %315 = vector.load %arg4[%c0_112, %c320_113] : memref<1x336xf32, #tpu.memory_space<vmem>>, vector<1x16xf32>
    %316 = vector.broadcast %315 : vector<1x16xf32> to vector<12x16xf32>
    %317 = arith.addf %314, %316 : vector<12x16xf32>
    %c144_114 = arith.constant 144 : index
    %c0_115 = arith.constant 0 : index
    %318 = vector.load %arg3[%c144_114, %c0_115] : memref<336x32xf32, #tpu.memory_space<vmem>>, vector<16x32xf32>
    %cst_116 = arith.constant dense<0.000000e+00> : vector<16x12xf32>
    %319 = tpu.matmul %318, %160, %cst_116 {dimension_numbers = #tpu.dot_dimension_numbers<[1], [1], [0], [0], [0, 0, 1, 0], [], []>} : vector<16x32xf32>, vector<12x32xf32>, vector<16x12xf32> -> vector<16x12xf32>
    %c168 = arith.constant 168 : index
    %c0_117 = arith.constant 0 : index
    %320 = vector.load %arg5[%c168, %c0_117] : memref<192x1xf32, #tpu.memory_space<vmem>>, vector<16x1xf32>
    %321 = vector.broadcast %320 : vector<16x1xf32> to vector<16x12xf32>
    %322 = arith.addf %319, %321 : vector<16x12xf32>
    %323 = vector.extract_strided_slice %317 {offsets = [0, 0], sizes = [12, 8], strides = [1, 1]} : vector<12x16xf32> to vector<12x8xf32>
    %cst_118 = arith.constant dense<0.000000e+00> : vector<12x128xf32>
    %324 = tpu.matmul %323, %312, %cst_118 {dimension_numbers = #tpu.dot_dimension_numbers<[1], [0], [0], [1], [0, 0, 1, 1], [], []>} : vector<12x8xf32>, vector<8x128xf32>, vector<12x128xf32> -> vector<12x128xf32>
    %cst_119 = arith.constant 0.353553385 : f32
    %325 = vector.broadcast %cst_119 : f32 to vector<12x128xf32>
    %326 = arith.mulf %324, %325 : vector<12x128xf32>
    %327 = arith.addf %326, %2 : vector<12x128xf32>
    %cst_120 = arith.constant dense<0xFF800000> : vector<128xf32>
    %328 = vector.multi_reduction <maximumf>, %327, %cst_120 [0] : vector<12x128xf32> to vector<128xf32>
    %329 = vector.shape_cast %328 : vector<128xf32> to vector<1x128xf32>
    %330 = vector.broadcast %329 : vector<1x128xf32> to vector<12x128xf32>
    %331 = arith.subf %327, %330 : vector<12x128xf32>
    %332 = math.exp %331 : vector<12x128xf32>
    %cst_121 = arith.constant dense<0.000000e+00> : vector<128xf32>
    %333 = vector.multi_reduction <add>, %332, %cst_121 [0] : vector<12x128xf32> to vector<128xf32>
    %334 = vector.shape_cast %333 : vector<128xf32> to vector<1x128xf32>
    %335 = vector.broadcast %334 : vector<1x128xf32> to vector<12x128xf32>
    %336 = arith.divf %332, %335 : vector<12x128xf32>
    %337 = vector.extract_strided_slice %322 {offsets = [0, 0], sizes = [8, 12], strides = [1, 1]} : vector<16x12xf32> to vector<8x12xf32>
    %cst_122 = arith.constant dense<0.000000e+00> : vector<8x128xf32>
    %338 = tpu.matmul %337, %336, %cst_122 {dimension_numbers = #tpu.dot_dimension_numbers<[1], [0], [0], [1], [0, 0, 1, 1], [], []>} : vector<8x12xf32>, vector<12x128xf32>, vector<8x128xf32> -> vector<8x128xf32>
    %339 = vector.extract_strided_slice %317 {offsets = [0, 8], sizes = [12, 8], strides = [1, 1]} : vector<12x16xf32> to vector<12x8xf32>
    %cst_123 = arith.constant dense<0.000000e+00> : vector<12x128xf32>
    %340 = tpu.matmul %339, %312, %cst_123 {dimension_numbers = #tpu.dot_dimension_numbers<[1], [0], [0], [1], [0, 0, 1, 1], [], []>} : vector<12x8xf32>, vector<8x128xf32>, vector<12x128xf32> -> vector<12x128xf32>
    %cst_124 = arith.constant 0.353553385 : f32
    %341 = vector.broadcast %cst_124 : f32 to vector<12x128xf32>
    %342 = arith.mulf %340, %341 : vector<12x128xf32>
    %343 = arith.addf %342, %2 : vector<12x128xf32>
    %cst_125 = arith.constant dense<0xFF800000> : vector<128xf32>
    %344 = vector.multi_reduction <maximumf>, %343, %cst_125 [0] : vector<12x128xf32> to vector<128xf32>
    %345 = vector.shape_cast %344 : vector<128xf32> to vector<1x128xf32>
    %346 = vector.broadcast %345 : vector<1x128xf32> to vector<12x128xf32>
    %347 = arith.subf %343, %346 : vector<12x128xf32>
    %348 = math.exp %347 : vector<12x128xf32>
    %cst_126 = arith.constant dense<0.000000e+00> : vector<128xf32>
    %349 = vector.multi_reduction <add>, %348, %cst_126 [0] : vector<12x128xf32> to vector<128xf32>
    %350 = vector.shape_cast %349 : vector<128xf32> to vector<1x128xf32>
    %351 = vector.broadcast %350 : vector<1x128xf32> to vector<12x128xf32>
    %352 = arith.divf %348, %351 : vector<12x128xf32>
    %353 = vector.extract_strided_slice %322 {offsets = [8, 0], sizes = [8, 12], strides = [1, 1]} : vector<16x12xf32> to vector<8x12xf32>
    %cst_127 = arith.constant dense<0.000000e+00> : vector<8x128xf32>
    %354 = tpu.matmul %353, %352, %cst_127 {dimension_numbers = #tpu.dot_dimension_numbers<[1], [0], [0], [1], [0, 0, 1, 1], [], []>} : vector<8x12xf32>, vector<12x128xf32>, vector<8x128xf32> -> vector<8x128xf32>
    %c328 = arith.constant 328 : index
    %c0_128 = arith.constant 0 : index
    %355 = vector.load %arg3[%c328, %c0_128] : memref<336x32xf32, #tpu.memory_space<vmem>>, vector<8x16xf32>
    %356 = tpu.concatenate %338, %354 in 0 : vector<8x128xf32>, vector<8x128xf32> -> vector<16x128xf32>
    %cst_129 = arith.constant dense<0.000000e+00> : vector<8x128xf32>
    %357 = tpu.matmul %355, %356, %cst_129 {dimension_numbers = #tpu.dot_dimension_numbers<[1], [0], [0], [1], [0, 0, 1, 1], [], []>} : vector<8x16xf32>, vector<16x128xf32>, vector<8x128xf32> -> vector<8x128xf32>
    %358 = arith.addf %312, %357 : vector<8x128xf32>
    %c184 = arith.constant 184 : index
    %c0_130 = arith.constant 0 : index
    %359 = vector.load %arg5[%c184, %c0_130] : memref<192x1xf32, #tpu.memory_space<vmem>>, vector<8x1xf32>
    %360 = vector.broadcast %359 : vector<8x1xf32> to vector<8x128xf32>
    %361 = arith.addf %358, %360 : vector<8x128xf32>
    %c0_131 = arith.constant 0 : index
    %c0_132 = arith.constant 0 : index
    %362 = vector.load %arg7[%c0_131, %c0_132] : memref<8x128xf32, #tpu.memory_space<vmem>>, vector<8x128xf32>
    tpu.vector_store %arg7[%c0_131, %c0_132], %361 {strides = array<i32>} : memref<8x128xf32, #tpu.memory_space<vmem>>, vector<8x128xf32>,
    return
  }
}

</mosaic_0001>

<bundles_post_ra>
// kernel: base_block.1
= control target key start
LH: loop header
LB: loop body
LE: loop exit
PB: predicated region body
PF: predicated region fallthrough
CT: control target
= control target key end

     0   :  { %vm46_vm0 = vcmask 261120   ;;  %vm128_vm1 = vcmask 64512   ;;  %vm216_vm2 = vcmask 1043456   ;;  %s4063_s24 = smov 120   ;;  %s4064_s29 = smov 8   ;;  %vm504_vm3 = vcmask 130048   ;;  %s4978_s2 = inlined_call_operand.vmem [shape: f32[32,304], index: 2, kind: input, shape index: {}]   ;;  %s4979_s1 = inlined_call_operand.vmem [shape: f32[12,32], index: 1, kind: input, shape index: {}]   ;;  %s4980_s0 = inlined_call_operand.vmem [shape: f32[8,128], index: 0, kind: input, shape index: {}]   ;;  %s4981_s4 = inlined_call_operand.vmem [shape: f32[1,336], index: 4, kind: input, shape index: {}]   ;;  %s4982_s6 = inlined_call_operand.vmem [shape: f32[64,128], index: 6, kind: input, shape index: {}]   ;;  %s4983_s3 = inlined_call_operand.vmem [shape: f32[336,32], index: 3, kind: input, shape index: {}]   ;;  %s4984_s8 = inlined_call_operand.vmem [shape: f32[12,32], index: 8, kind: output, shape index: {1}]   ;;  %s4985_s5 = inlined_call_operand.vmem [shape: f32[192,1], index: 5, kind: input, shape index: {}]   ;;  %s4986_s7 = inlined_call_operand.vmem [shape: f32[8,128], index: 7, kind: output, shape index: {0}]  }
   0x1   :  { %v4139_v0 = vld [vmem:[%s4978_s2 + $0x10] sm:$0xff]  ;;  %v4144_v1 = vld [vmem:[%s4978_s2 + $0x28] sm:$0xff]  ;;  %v4149_v2 = vld [vmem:[%s4978_s2 + $0x40] sm:$0xff]  ;;  %s4065_s30 = smov 112   ;;  %vm596_vm4 = vcmask 257024   ;;  %s4066_s9 = smov 80  }
   0x2   :  { %v3742_v3 = vpack.c.bf16 %v4144_v1, %v4139_v0  ;;  %v4156_v4 = vld [vmem:[%s4978_s2 + $0x58] sm:$0xff]  ;;  %v4161_v5 = vld [vmem:[%s4979_s1] sm:$0xff]  ;;  %v4170_v7 = vld [vmem:[%s4979_s1 + $0x8] sm:$0xf]  ;;  %s4067_s18 = smov 48   ;;  %s4070_s27 = smov 64  }
   0x3   :  { %v3746_v6 = vpack.c.bf16 %v4156_v4, %v4149_v2  ;;  %3537 = vmatprep.mubr.msk.f32.mxu0 %vm46_vm0, %v4161_v5  ;;  %v4177_v8 = vld [vmem:[%s4980_s0] sm:$0xff]  ;;  %v32_v19 = vld [vmem:[%s4982_s6 + $0x8] sm:$0xf]  ;;  %s4071_s28 = smov 32   ;;  %vm4297_vm5 = vmpackc.low %vm46_vm0, %vm46_vm0  ;;  %vm4072_vm6 = vmmov 1   ;;  %vm819_vm8 = vcmask 93184  }
   0x4   :  { %3743 = vmatprep.subr.bf16.mxu0 %v3742_v3  ;;  %3540 = vmatprep.subr.mxu1 %v4177_v8  ;;  %v4187_v9 = vld [vmem:[%s4981_s4] ss:$0 sm:$0xff]  ;;  %vm4302_vm7 = vmpackc.low %vm216_vm2, %vm4072_vm6  ;;  %vm815_vm9 = vcmask 97280   ;;  %s4073_s16 = smov 16   ;;  %vm1147_vm10 = vcmask 523264   ;;  %vm1321_vm11 = vcmask 392192  }
   0x5   :  { %3745 = vmatpush3.bf16.msra.mxu0 %v3742_v3  ;;  %3541 = vmatpush3.msra.mxu1 %v4177_v8  ;;  %v31_v17 = vld [vmem:[%s4982_s6] sm:$0xff]  ;;  %vm4075_vm12 = vmmov 0   ;;  %vm1530_vm13 = vcmask 1040384   ;;  %s4088_s20 = smov 121   ;;  %s4089_s21 = smov 1  }
   0x6   :  { %3747 = vmatprep.subr.bf16.mxu0 %v3746_v6  ;;  %3545 = vmatprep.subr.mxu1 %v4177_v8  ;;  %v502_v3 = vld [vmem:[%s4983_s3 + $0x80] sm:$0xff]  ;;  %s4090_s25 = smov 119  }
   0x9   :  { %3749 = vmatpush3.bf16.msra.mxu0 %v3746_v6  ;;  %v503_v6 = vld [vmem:[%s4983_s3 + $0x88] sm:$0xff] }
   0xa   :  { %3555 = vmatprep.subr.mxu0 %v4177_v8 }
   0xc   :  { %3538 = vmatmul.mubr.msk.f32.vlgmr.msra.gmra.mrb[0].mxu0 %vm46_vm0, %v4170_v7 }
  0x12   :  { %3556 = vmatpush3.xpose.msra.mxu0 %v4177_v8 }
  0xdf   :  { %v3539_v10 = vpop.f32.mrb[0].mxu0 }
  0xe0   :  { %v119_v11 = vpop.f32.mrb[1].mxu0  ;;  %v125_v13 = vadd.f32 %v3539_v10, %v4187_v9  ;;  %v3750_v10 = vpack.c.bf16 %v503_v6, %v502_v3 }
  0xe1   :  { %v120_v12 = vadd.f32 %v4187_v9, %v119_v11 }
  0xe3   :  { %3542 = vmatprep.mubr.msk.f32.mxu1 %vm128_vm1, %v120_v12 }
  0xe4   :  { %3543 = vmatmul.mubr.msk.f32.vlgmr.msra.gmra.mrb[0].mxu1 %vm128_vm1, %v125_v13 }
  0xe5   :  { %3546 = vmatpush3.xpose.msra.mxu1 %v4177_v8 }
  0xe6   :  { %3550 = vmatprep.subr.mxu1 %v4177_v8 }
 0x1b7   :  { %v3544_v14 = vpop.f32.mrb[0].mxu1 }
 0x1b8   :  { %v211_v15 = vmul.f32 0.35355338, %v3544_v14  ;;  %v201_v16 = vpop.f32.mrb[1].mxu1 }
 0x1b9   :  { %v210_v18 = vmul.f32 0.35355338, %v201_v16 }
 0x1ba   :  { %v213_v21 = vadd.f32 %v211_v15, %v32_v19 }
 0x1bb   :  { %v212_v20 = vadd.f32 %v210_v18, %v31_v17 }
 0x1bc   :  { %v217_v22 = vsel %vm216_vm2, %v213_v21, -inf }
 0x1bd   :  { %214 = vmax.xlane.f32.xlu0 %v212_v20 }
 0x1c1   :  { %218 = vmax.xlane.f32.xlu0 %v217_v22 }
 0x1d7   :  { %310 = vrot.lane.b32.xlu0 %v120_v12, %s4063_s24 }
 0x24a   :  { %v215_v23 = vpop.xlane.xlu0 %214 }
 0x24b   :  { %v220_v24 = vsub.f32 %v212_v20, %v215_v23 }
 0x24d   :  { %v222_v25 = vmul.f32 1.442695, %v220_v24 }
 0x24e   :  { %v219_v26 = vpop.xlane.xlu0 %218 }
 0x24f   :  { %3971 = vpow2.f32 %v222_v25  ;;  %v221_v27 = vsub.f32 %v213_v21, %v219_v26 }
 0x251   :  { %v224_v28 = vmul.f32 1.442695, %v221_v27 }
 0x252   :  { %v311_v38 = vpop.permute.xlu0 %310 }
 0x253   :  { %3973 = vpow2.f32 %v224_v28 }
 0x259   :  { %v3972_v29 = vpop.eup %3971 }
 0x25a   :  { %226 = vadd.xlane.f32.xlu1 %v3972_v29 }
 0x25d   :  { %v3974_v30 = vpop.eup %3973 }
 0x25e   :  { %v228_v31 = vsel %vm216_vm2, %v3974_v30, 0.0 }
 0x25f   :  { %229 = vadd.xlane.f32.xlu1 %v228_v31 }
 0x270   :  { %312 = vrot.lane.b32.xlu1 %v125_v13, %s4063_s24 }
 0x2e7   :  { %v227_v32 = vpop.xlane.xlu1 %226 }
 0x2e8   :  { %3975 = vrcp.f32 %v227_v32 }
 0x2ec   :  { %v230_v33 = vpop.xlane.xlu1 %229 }
 0x2ed   :  { %3977 = vrcp.f32 %v230_v33 }
 0x2f0   :  { %v313_v39 = vpop.permute.xlu1 %312 }
 0x2f2   :  { %v3976_v34 = vpop.eup %3975 }
 0x2f3   :  { %v232_v35 = vmul.f32 %v3976_v34, %v3972_v29  ;;  %v4243_v34 = vld [vmem:[%s4978_s2 + $0x8] sm:$0xff] }
 0x2f5   :  { %3547 = vmatprep.mubr.f32.mxu1 %v232_v35  ;;  %v4248_v35 = vld [vmem:[%s4978_s2 + $0x20] sm:$0xff] }
 0x2f7   :  { %v3978_v36 = vpop.eup %3977 }
 0x2f8   :  { %v234_v37 = vmul.f32 %v3978_v36, %v3974_v30  ;;  %v631_v36 = vld [vmem:[%s4978_s2] sm:$0xff] }
 0x2fa   :  { %3548 = vmatmul.mubr.f32.vlgmr.msra.gmra.mrb[2].mxu1 %v234_v37  ;;  %v3754_v37 = vpack.c.bf16 %v4248_v35, %v4243_v34 }
 0x2fb   :  { %3551 = vmatpush3.msra.mxu1 %v4177_v8  ;;  %3552 = vmatprep.mubr.msk.f32.mxu1 %vm128_vm1, %v311_v38  ;;  %v633_v38 = vld [vmem:[%s4978_s2 + $0x18] sm:$0xff] }
 0x2fc   :  { %3751 = vmatprep.subr.bf16.mxu1 %v3750_v10  ;;  %3755 = vmatprep.subr.bf16.mxu0 %v3754_v37 }
 0x2fe   :  { %3553 = vmatmul.mubr.msk.f32.vlgmr.msra.gmra.mrb[4].mxu1 %vm128_vm1, %v313_v39  ;;  %v3756_v39 = vpack.c.bf16 %v633_v38, %v631_v36 }
 0x2ff   :  { %3753 = vmatpush3.bf16.msra.mxu1 %v3750_v10 }
 0x3cd   :  { %v3549_v40 = vpop.f32.mrb[2].mxu1 }
 0x3ce   :  { %v301_v41 = vpop.f32.mrb[3].mxu1 }
 0x3d1   :  { %v3554_v42 = vpop.f32.mrb[4].mxu1 }
 0x3d2   :  { %v394_v43 = vmul.f32 0.35355338, %v3554_v42  ;;  %v384_v44 = vpop.f32.mrb[5].mxu1 }
 0x3d3   :  { %v393_v45 = vmul.f32 0.35355338, %v384_v44 }
 0x3d4   :  { %v396_v46 = vadd.f32 %v394_v43, %v32_v19  ;;  %v635_v43 = vld [vmem:[%s4978_s2 + $0x30] sm:$0xff] }
 0x3d5   :  { %v395_v47 = vadd.f32 %v393_v45, %v31_v17  ;;  %v4987_v45 = vmov 0.0  }
 0x3d6   :  { %v399_v48 = vsel %vm216_vm2, %v396_v46, -inf }
 0x3d7   :  { %400 = vmax.xlane.f32.xlu0 %v399_v48  ;;  %397 = vmax.xlane.f32.xlu1 %v395_v47 }
 0x464   :  { %v401_v49 = vpop.xlane.xlu0 %400  ;;  %v398_v50 = vpop.xlane.xlu1 %397 }
 0x465   :  { %v403_v51 = vsub.f32 %v396_v46, %v401_v49  ;;  %v402_v52 = vsub.f32 %v395_v47, %v398_v50 }
 0x467   :  { %v406_v53 = vmul.f32 1.442695, %v403_v51  ;;  %v404_v54 = vmul.f32 1.442695, %v402_v52 }
 0x469   :  { %3979 = vpow2.f32 %v406_v53 }
 0x46a   :  { %3981 = vpow2.f32 %v404_v54 }
 0x473   :  { %v3980_v55 = vpop.eup %3979 }
 0x474   :  { %v3982_v56 = vpop.eup %3981  ;;  %v410_v57 = vsel %vm216_vm2, %v3980_v55, 0.0 }
 0x475   :  { %408 = vadd.xlane.f32.xlu0 %v3982_v56  ;;  %411 = vadd.xlane.f32.xlu1 %v410_v57 }
 0x502   :  { %v409_v58 = vpop.xlane.xlu0 %408  ;;  %v412_v59 = vpop.xlane.xlu1 %411 }
 0x503   :  { %3983 = vrcp.f32 %v409_v58 }
 0x504   :  { %3985 = vrcp.f32 %v412_v59 }
 0x50d   :  { %v3984_v60 = vpop.eup %3983 }
 0x50e   :  { %v3986_v61 = vpop.eup %3985  ;;  %v414_v62 = vmul.f32 %v3984_v60, %v3982_v56 }
 0x50f   :  { %v416_v63 = vmul.f32 %v3986_v61, %v3980_v55 }
 0x510   :  { %3557 = vmatprep.mubr.f32.mxu0 %v414_v62 }
 0x511   :  { %3558 = vmatmul.mubr.f32.vlgmr.msra.gmra.mrb[2].mxu0 %v416_v63 }
 0x512   :  { %3757 = vmatpush1.bf16.msra.mxu0 %v3756_v39  ;;  %709 = vmatprep.mubr.f32.mxu0 %v4987_v45 }
 0x5e4   :  { %v3559_v11 = vpop.f32.mrb[2].mxu0 }
 0x5e5   :  { %496 = vrot.lane.b32.xlu1 %v3559_v11, %s4064_s29  ;;  %v483_v12 = vpop.f32.mrb[3].mxu0 }
 0x5e6   :  { %494 = vrot.lane.b32.xlu0 %v483_v12, %s4064_s29 }
 0x5e9   :  { %588 = vrot.lane.b32.xlu1 %v4187_v9, %s4065_s30 }
 0x657   :  { %v497_v13 = vpop.permute.xlu1 %496 }
 0x658   :  { %v495_v14 = vpop.permute.xlu0 %494  ;;  %v501_v16 = vsel %vm128_vm1, %v3549_v40, %v497_v13  ;;  %v4263_v40 = vld [vmem:[%s4978_s2 + $0x38] sm:$0xff] }
 0x659   :  { %v500_v15 = vsel %vm128_vm1, %v301_v41, %v495_v14  ;;  %v4268_v41 = vld [vmem:[%s4978_s2 + $0x50] sm:$0xff] }
 0x65a   :  { %3564 = vmatprep.mubr.msk.f32.mxu1 %vm504_vm3, %v500_v15  ;;  %v3758_v42 = vpack.c.bf16 %v4268_v41, %v4263_v40 }
 0x65b   :  { %3565 = vmatmul.mubr.msk.f32.vlgmr.msra.gmra.mrb[6].mxu1 %vm504_vm3, %v501_v16  ;;  %v589_v18 = vpop.permute.xlu1 %588  ;;  %v4997_v16 = vmov 0 }
 0x65c   :  { %3759 = vmatprep.subr.bf16.mxu0 %v3758_v42  ;;  %v4998_v16 = vsel %vm4297_vm5, 4294967295, %v4997_v16 }
 0x65d   :  { %4999 = vst [vmem:[#allocation2_spill] sm:$0xff] %v4998_v16 }
 0x72e   :  { %v3566_v17 = vpop.f32.mrb[6].mxu1 }
 0x72f   :  { %v587_v19 = vadd.f32 %v3566_v17, %v4170_v7  ;;  %v577_v20 = vpop.f32.mrb[7].mxu1 }
 0x730   :  { %v586_v21 = vadd.f32 %v577_v20, %v4161_v5 }
 0x731   :  { %v4226_v22 = vadd.f32 %v589_v18, %v587_v19  ;;  %v5000_v19 = vmov 0 }
 0x732   :  { %v4228_v23 = vadd.f32 %v589_v18, %v586_v21  ;;  %v5001_v19 = vsel %vm4302_vm7, 4294967295, %v5000_v19 }
 0x733   :  { %v597_v24 = vsel %vm596_vm4, %v4226_v22, 0.0  ;;  %5002 = vst [vmem:[#allocation3_spill] sm:$0xff] %v5001_v19 }
 0x734   :  { %598 = vadd.xlane.f32.xlu0 %v597_v24  ;;  %v593_v25 = vsel %vm46_vm0, %v4228_v23, 0.0 }
 0x735   :  { %594 = vadd.xlane.f32.xlu1 %v593_v25 }
 0x746   :  { %621 = vrot.lane.b32.xlu1 %v4187_v9, %s4066_s9 }
 0x7c1   :  { %v599_v7 = vpop.xlane.xlu0 %598 }
 0x7c2   :  { %v602_v26 = vmul.f32 0.03125, %v599_v7  ;;  %v595_v5 = vpop.xlane.xlu1 %594 }
 0x7c3   :  { %v601_v27 = vmul.f32 0.03125, %v595_v5  ;;  %v34_v5 = vld [vmem:[%s4982_s6 + $0x18] sm:$0xf] }
 0x7c4   :  { %v604_v28 = vsub.f32 %v4226_v22, %v602_v26 }
 0x7c5   :  { %v603_v29 = vsub.f32 %v4228_v23, %v601_v27 }
 0x7c6   :  { %v606_v32 = vmul.f32 %v604_v28, %v604_v28  ;;  %v622_v53 = vpop.permute.xlu1 %621 }
 0x7c7   :  { %v605_v30 = vmul.f32 %v603_v29, %v603_v29 }
 0x7c8   :  { %v610_v33 = vsel %vm596_vm4, %v606_v32, 0.0 }
 0x7c9   :  { %v607_v31 = vsel %vm46_vm0, %v605_v30, 0.0 }
 0x7ca   :  { %608 = vadd.xlane.f32.xlu0 %v607_v31 }
 0x7ce   :  { %611 = vadd.xlane.f32.xlu0 %v610_v33 }
 0x7e4   :  { %626 = vrot.lane.b32.xlu0 %v4187_v9, %s4067_s18  ;;  %v637_v9 = vld [vmem:[%s4978_s2 + $0x48] sm:$0xff]  ;;  %s4069_s2 = smov 96  }
 0x7e5   :  { %v3760_v44 = vpack.c.bf16 %v637_v9, %v635_v43 }
 0x7e7   :  { %3761 = vmatpush1.bf16.msra.mxu0 %v3760_v44 }
 0x857   :  { %v609_v46 = vpop.xlane.xlu0 %608 }
 0x858   :  { %v613_v47 = vmul.f32 0.03125, %v609_v46 }
 0x85a   :  { %v615_v48 = vadd.f32 1e-05, %v613_v47 }
 0x85b   :  { %v612_v49 = vpop.xlane.xlu0 %611 }
 0x85c   :  { %3987 = vrsqrt.f32 %v615_v48  ;;  %v614_v50 = vmul.f32 0.03125, %v612_v49 }
 0x85e   :  { %v616_v51 = vadd.f32 1e-05, %v614_v50 }
 0x85f   :  { %v627_v55 = vpop.permute.xlu0 %626 }
 0x860   :  { %3989 = vrsqrt.f32 %v616_v51 }
 0x866   :  { %v3988_v52 = vpop.eup %3987 }
 0x867   :  { %v619_v54 = vmul.f32 %v3988_v52, %v603_v29  ;;  %v33_v29 = vld [vmem:[%s4982_s6 + $0x10] sm:$0xff] }
 0x869   :  { %v624_v56 = vmul.f32 %v622_v53, %v619_v54 }
 0x86a   :  { %v3990_v57 = vpop.eup %3989 }
 0x86b   :  { %v620_v58 = vmul.f32 %v3990_v57, %v604_v28  ;;  %v629_v59 = vadd.f32 %v627_v55, %v624_v56 }
 0x86d   :  { %v625_v60 = vmul.f32 %v622_v53, %v620_v58  ;;  %3325 = vmatmul.mubr.msk.f32.vlgmr.msra.gmra.mrb[4].mxu0 %vm46_vm0, %v629_v59 }
 0x86e   :  { %715 = vmatprep.mubr.f32.mxu0 %v4987_v45 }
 0x86f   :  { %v630_v61 = vadd.f32 %v627_v55, %v625_v60 }
 0x871   :  { %3326 = vmatmul.mubr.msk.f32.gmra.mrb[6].mxu0 %vm46_vm0, %v630_v61 }
 0x940   :  { %v711_v62 = vpop.f32.mrb[4].mxu0 }
 0x941   :  { %v4282_v63 = vpop.f32.mrb[5].mxu0  ;;  %3571 = vmatprep.mubr.msk.f32.mxu1 %vm46_vm0, %v711_v62 }
 0x944   :  { %v717_v3 = vpop.f32.mrb[6].mxu0 }
 0x945   :  { %925 = vrot.lane.b32.xlu0 %v717_v3, %s4069_s2  ;;  %v4286_v6 = vpop.f32.mrb[7].mxu0  ;;  %v3888_v10 = vpack.i.bf16 %v717_v3, %v711_v62 }
 0x946   :  { %v3898_v11 = vpack.i.bf16 %v4286_v6, %v4282_v63  ;;  %v3768_v12 = vpack.c.bf16 %v4286_v6, %v4282_v63 }
 0x947   :  { %3889 = vrot.lane.b32.xlu1 %v3888_v10, %s4070_s27 }
 0x94b   :  { %3894 = vrot.lane.b32.xlu1 %v3888_v10, %s4071_s28 }
 0x94f   :  { %923 = vrot.lane.b32.xlu1 %v711_v62, %s4069_s2 }
 0x9b7   :  { %v926_v7 = vpop.permute.xlu0 %925 }
 0x9b9   :  { %v3890_v13 = vpop.permute.xlu1 %3889 }
 0x9ba   :  { %v3892_v14 = vunpack.i.h.bf16 %v3890_v13  ;;  %v3891_v15 = vunpack.i.l.bf16 %v3890_v13 }
 0x9bc   :  { %v3762_v17 = vpack.c.bf16 %v3892_v14, %v3891_v15 }
 0x9bd   :  { %v3895_v18 = vpop.permute.xlu1 %3894 }
 0x9be   :  { %v3897_v20 = vunpack.i.h.bf16 %v3895_v18  ;;  %v3896_v21 = vunpack.i.l.bf16 %v3895_v18  ;;  %3764 = vmatprep.subr.msk.bf16.mxu1 %vm4297_vm5, %v3762_v17 }
 0x9bf   :  { %3767 = vmatpush3.bf16.xpose.msk.msra.mxu1 %vm4297_vm5, %v3762_v17 }
 0x9c0   :  { %v3774_v24 = vpack.c.bf16 %v3897_v20, %v3896_v21  ;;  %3770 = vmatprep.subr.msk.bf16.mxu1 %vm4302_vm7, %v3768_v12 }
 0x9c1   :  { %v924_v25 = vpop.permute.xlu1 %923 }
 0x9c2   :  { %3776 = vmatprep.subr.msk.bf16.mxu0 %vm4297_vm5, %v3774_v24  ;;  %3585 = vmatprep.mubr.msk.f32.mxu0 %vm46_vm0, %v924_v25 }
 0x9c3   :  { %3779 = vmatpush3.bf16.xpose.msk.msra.mxu0 %vm4297_vm5, %v3774_v24 }
 0x9c6   :  { %3572 = vmatmul.mubr.msk.f32.vlgmr.msra.gmra.mrb[8].mxu1 %vm46_vm0, %v717_v3 }
 0x9c7   :  { %3773 = vmatpush3.bf16.msk.msra.mxu1 %vm4302_vm7, %v3768_v12 }
 0x9ca   :  { %3586 = vmatmul.mubr.msk.f32.vlgmr.msra.gmra.mrb[8].mxu0 %vm46_vm0, %v926_v7 }
 0xa99   :  { %v3573_v26 = vpop.f32.mrb[8].mxu1 }
 0xa9a   :  { %v812_v27 = vmul.f32 0.17677669, %v3573_v26  ;;  %v802_v28 = vpop.f32.mrb[9].mxu1 }
 0xa9b   :  { %v811_v30 = vmul.f32 0.17677669, %v802_v28 }
 0xa9c   :  { %v814_v31 = vadd.f32 %v812_v27, %v34_v5 }
 0xa9d   :  { %v3587_v32 = vpop.f32.mrb[8].mxu0  ;;  %v813_v33 = vadd.f32 %v811_v30, %v33_v29  ;;  %v1140_v30 = vld [vmem:[%s4983_s3 + $0x8] sm:$0xff] }
 0xa9e   :  { %v1005_v36 = vpop.f32.mrb[9].mxu0  ;;  %v820_v37 = vsel %vm819_vm8, %v814_v31, -inf  ;;  %v1015_v38 = vmul.f32 0.17677669, %v3587_v32 }
 0xa9f   :  { %v1014_v39 = vmul.f32 0.17677669, %v1005_v36  ;;  %821 = vmax.xlane.f32.xlu0 %v820_v37  ;;  %v816_v42 = vsel %vm815_vm9, %v813_v33, -inf  ;;  %v1143_v37 = vld [vmem:[%s4983_s3 + $0x20] sm:$0xff] }
 0xaa0   :  { %817 = vmax.xlane.f32.xlu1 %v816_v42  ;;  %v1017_v44 = vadd.f32 %v1015_v38, %v34_v5  ;;  %v1144_v38 = vld [vmem:[%s4983_s3 + $0x28] sm:$0xff]  ;;  %v1145_v42 = vld [vmem:[%s4983_s3 + $0x30] sm:$0xff] }
 0xaa1   :  { %v1016_v43 = vadd.f32 %v1014_v39, %v33_v29  ;;  %v1139_v29 = vld [vmem:[%s4983_s3] sm:$0xff]  ;;  %v3794_v39 = vpack.c.bf16 %v1144_v38, %v1143_v37 }
 0xaa2   :  { %v1021_v46 = vsel %vm819_vm8, %v1017_v44, -inf  ;;  %v3786_v32 = vpack.c.bf16 %v1140_v30, %v1139_v29 }
 0xaa3   :  { %v1018_v9 = vsel %vm815_vm9, %v1016_v43, -inf }
 0xaa4   :  { %1019 = vmax.xlane.f32.xlu0 %v1018_v9  ;;  %3787 = vmatprep.subr.bf16.mxu0 %v3786_v32 }
 0xaa5   :  { %3789 = vmatpush3.bf16.msra.mxu0 %v3786_v32 }
 0xaa8   :  { %1022 = vmax.xlane.f32.xlu0 %v1021_v46 }
 0xb2c   :  { %v822_v47 = vpop.xlane.xlu0 %821 }
 0xb2d   :  { %v824_v48 = vsub.f32 %v814_v31, %v822_v47  ;;  %v818_v49 = vpop.xlane.xlu1 %817  ;;  %v1141_v31 = vld [vmem:[%s4983_s3 + $0x10] sm:$0xff] }
 0xb2e   :  { %v823_v50 = vsub.f32 %v813_v33, %v818_v49  ;;  %v1142_v33 = vld [vmem:[%s4983_s3 + $0x18] sm:$0xff] }
 0xb2f   :  { %v827_v51 = vmul.f32 1.442695, %v824_v48  ;;  %v3790_v36 = vpack.c.bf16 %v1142_v33, %v1141_v31 }
 0xb30   :  { %v825_v52 = vmul.f32 1.442695, %v823_v50  ;;  %v1231_v50 = vld [vmem:[%s4981_s4] sm:$0x3] }
 0xb31   :  { %3991 = vpow2.f32 %v827_v51  ;;  %v1020_v53 = vpop.xlane.xlu0 %1019  ;;  %3791 = vmatprep.subr.bf16.mxu0 %v3790_v36 }
 0xb32   :  { %3993 = vpow2.f32 %v825_v52  ;;  %v1024_v54 = vsub.f32 %v1016_v43, %v1020_v53  ;;  %v1146_v43 = vld [vmem:[%s4983_s3 + $0x38] sm:$0xff]  ;;  %3793 = vmatpush3.bf16.msra.mxu0 %v3790_v36 }
 0xb33   :  { %3795 = vmatprep.subr.bf16.mxu0 %v3794_v39  ;;  %v3798_v9 = vpack.c.bf16 %v1146_v43, %v1145_v42 }
 0xb34   :  { %v1026_v55 = vmul.f32 1.442695, %v1024_v54 }
 0xb35   :  { %v1023_v56 = vpop.xlane.xlu0 %1022 }
 0xb36   :  { %3995 = vpow2.f32 %v1026_v55  ;;  %v1025_v57 = vsub.f32 %v1017_v44, %v1023_v56  ;;  %3797 = vmatpush3.bf16.msra.mxu0 %v3794_v39  ;;  %v1233_v44 = vlaneseq }
 0xb37   :  { %3799 = vmatprep.subr.bf16.mxu0 %v3798_v9 }
 0xb38   :  { %v1028_v58 = vmul.f32 1.442695, %v1025_v57  ;;  %v1234_v47 = vshrl.u32 %v1233_v44, 7 }
 0xb3a   :  { %3997 = vpow2.f32 %v1028_v58  ;;  %3801 = vmatpush3.bf16.msra.mxu0 %v3798_v9  ;;  %v1235_v49 = vsub.s32 0, %v1234_v47  ;;  %v1239_v54 = vsub.s32 1, %v1234_v47 }
 0xb3b   :  { %v3992_v59 = vpop.eup %3991 }
 0xb3c   :  { %v3994_v60 = vpop.eup %3993  ;;  %v832_v61 = vsel %vm819_vm8, %v3992_v59, 0.0  ;;  %v1236_v53 = vrot.slane %v1231_v50, %v1235_v49  ;;  %v1240_v55 = vrot.slane %v1231_v50, %v1239_v54 }
 0xb3d   :  { %833 = vadd.xlane.f32.xlu0 %v832_v61  ;;  %v829_v62 = vsel %vm815_vm9, %v3994_v60, 0.0 }
 0xb3e   :  { %830 = vadd.xlane.f32.xlu1 %v829_v62 }
 0xb40   :  { %v3996_v3 = vpop.eup %3995 }
 0xb41   :  { %v1030_v10 = vsel %vm815_vm9, %v3996_v3, 0.0 }
 0xb42   :  { %1031 = vadd.xlane.f32.xlu1 %v1030_v10 }
 0xb44   :  { %v3998_v12 = vpop.eup %3997 }
 0xb45   :  { %v1033_v13 = vsel %vm819_vm8, %v3998_v12, 0.0 }
 0xb46   :  { %1034 = vadd.xlane.f32.xlu0 %v1033_v13 }
 0xb53   :  { %3899 = vrot.lane.b32.xlu1 %v3898_v11, %s4069_s2 }
 0xbca   :  { %v834_v14 = vpop.xlane.xlu0 %833 }
 0xbcb   :  { %3999 = vrcp.f32 %v834_v14  ;;  %v831_v15 = vpop.xlane.xlu1 %830 }
 0xbcc   :  { %4001 = vrcp.f32 %v831_v15 }
 0xbcf   :  { %v1032_v17 = vpop.xlane.xlu1 %1031 }
 0xbd0   :  { %4003 = vrcp.f32 %v1032_v17 }
 0xbd3   :  { %v3900_v18 = vpop.permute.xlu1 %3899  ;;  %v1035_v20 = vpop.xlane.xlu0 %1034 }
 0xbd4   :  { %v3902_v21 = vunpack.i.h.bf16 %v3900_v18  ;;  %v3901_v24 = vunpack.i.l.bf16 %v3900_v18  ;;  %4005 = vrcp.f32 %v1035_v20 }
 0xbd5   :  { %v4000_v25 = vpop.eup %3999 }
 0xbd6   :  { %v4002_v7 = vpop.eup %4001  ;;  %v3780_v26 = vpack.c.bf16 %v3902_v21, %v3901_v24  ;;  %v838_v63 = vmul.f32 %v4000_v25, %v3992_v59 }
 0xbd7   :  { %v836_v5 = vmul.f32 %v4002_v7, %v3994_v60 }
 0xbd8   :  { %3782 = vmatprep.subr.msk.bf16.mxu1 %vm4302_vm7, %v3780_v26 }
 0xbd9   :  { %3578 = vmatprep.mubr.msk.f32.mxu1 %vm815_vm9, %v836_v5 }
 0xbda   :  { %v4004_v6 = vpop.eup %4003  ;;  %3579 = vmatmul.mubr.msk.f32.vlgmr.msra.gmra.mrb[10].mxu1 %vm815_vm9, %v838_v63 }
 0xbdb   :  { %3785 = vmatpush3.bf16.msk.msra.mxu1 %vm4302_vm7, %v3780_v26  ;;  %v1037_v11 = vmul.f32 %v4004_v6, %v3996_v3  ;;  %v3903_v6 = vpack.i.bf16 %v4248_v35, %v4243_v34 }
 0xbdd   :  { %3592 = vmatprep.mubr.msk.f32.mxu1 %vm815_vm9, %v1037_v11  ;;  %v1291_v11 = vld [vmem:[%s4981_s4 + $0x1] sm:$0x3] }
 0xbde   :  { %v4006_v27 = vpop.eup %4005 }
 0xbdf   :  { %v1039_v28 = vmul.f32 %v4006_v27, %v3998_v12  ;;  %v1300_v27 = vrot.slane %v1291_v11, %v1239_v54 }
 0xbe1   :  { %3593 = vmatmul.mubr.msk.f32.vlgmr.msra.gmra.mrb[12].mxu1 %vm815_vm9, %v1039_v28  ;;  %v1296_v28 = vrot.slane %v1291_v11, %v1235_v49 }
 0xcad   :  { %v3580_v46 = vpop.f32.mrb[10].mxu1 }
 0xcae   :  { %v914_v48 = vpop.f32.mrb[11].mxu1 }
 0xcb4   :  { %v3594_v51 = vpop.f32.mrb[12].mxu1 }
 0xcb5   :  { %1133 = vrot.lane.b32.xlu1 %v3594_v51, %s4071_s28  ;;  %v1120_v52 = vpop.f32.mrb[13].mxu1 }
 0xcb6   :  { %1131 = vrot.lane.b32.xlu0 %v1120_v52, %s4071_s28 }
 0xcb9   :  { %1241 = vrot.lane.b32.xlu1 %v1236_v53, %s4073_s16 }
 0xcbd   :  { %1243 = vrot.lane.b32.xlu1 %v1240_v55, %s4073_s16  ;;  %v1423_v55 = vld [vmem:[%s4983_s3 + $0x40] sm:$0xff] }
 0xd27   :  { %v1134_v56 = vpop.permute.xlu1 %1133 }
 0xd28   :  { %v1132_v57 = vpop.permute.xlu0 %1131  ;;  %v1138_v59 = vsel %vm46_vm0, %v3580_v46, %v1134_v56  ;;  %v1424_v56 = vld [vmem:[%s4983_s3 + $0x48] sm:$0xff] }
 0xd29   :  { %v1137_v58 = vsel %vm46_vm0, %v914_v48, %v1132_v57  ;;  %v3810_v57 = vpack.c.bf16 %v1424_v56, %v1423_v55  ;;  %v4076_v55 = vmov 0   ;;  %v1652_v56 = vld [vmem:[%s4985_s5 + $0x8] sm:$0xff] }
 0xd2a   :  { %3611 = vmatprep.mubr.msk.f32.mxu0 %vm1147_vm10, %v1137_v58  ;;  %v1425_v58 = vld [vmem:[%s4983_s3 + $0x50] sm:$0xff]  ;;  %3924 = vset.pattern.permute.xlu1 %v4076_v55 }
 0xd2b   :  { %3612 = vmatmul.mubr.msk.f32.vlgmr.msra.gmra.mrb[10].mxu0 %vm1147_vm10, %v1138_v59  ;;  %v1242_v60 = vpop.permute.xlu1 %1241  ;;  %v1426_v59 = vld [vmem:[%s4983_s3 + $0x58] sm:$0xff]  ;;  %3923 = vset.pattern.permute.xlu0 %v4076_v55 }
 0xd2c   :  { %3652 = vmatprep.mubr.msk.f32.mxu0 %vm4075_vm12, %v4987_v45 }
 0xd2f   :  { %v1244_v61 = vpop.permute.xlu1 %1243 }
 0xd30   :  { %v1245_v12 = vsel %vm504_vm3, %v1242_v60, %v1244_v61  ;;  %v3814_v60 = vpack.c.bf16 %v1426_v59, %v1425_v58  ;;  %v1427_v61 = vld [vmem:[%s4983_s3 + $0x60] sm:$0xff]  ;;  %v1653_v58 = vld [vmem:[%s4985_s5 + $0x10] sm:$0xff]  ;;  %v1654_v59 = vld [vmem:[%s4985_s5 + $0x18] sm:$0xff] }
 0xdfe   :  { %v3613_v62 = vpop.f32.mrb[10].mxu0 }
 0xdff   :  { %v1230_v3 = vadd.f32 %v3613_v62, %v4226_v22  ;;  %v1220_v10 = vpop.f32.mrb[11].mxu0  ;;  %v3908_v22 = vpack.i.bf16 %v4268_v41, %v4263_v40  ;;  %v1428_v62 = vld [vmem:[%s4983_s3 + $0x68] sm:$0xff] }
 0xe00   :  { %v1229_v13 = vadd.f32 %v1220_v10, %v4228_v23  ;;  %v3343_v23 = vld [vmem:[%s4981_s4 + $0x1] ss:$0 sm:$0xff]  ;;  %v1429_v10 = vld [vmem:[%s4983_s3 + $0x70] sm:$0xff] }
 0xe01   :  { %v4383_v14 = vadd.f32 %v1245_v12, %v1230_v3  ;;  %v3818_v3 = vpack.c.bf16 %v1428_v62, %v1427_v61  ;;  %v1656_v61 = vld [vmem:[%s4985_s5 + $0x28] sm:$0xff]  ;;  %v1657_v62 = vld [vmem:[%s4985_s5 + $0x30] sm:$0xff] }
 0xe02   :  { %v4385_v15 = vadd.f32 %v1245_v12, %v1229_v13  ;;  %v1430_v12 = vld [vmem:[%s4983_s3 + $0x78] sm:$0xff] }
 0xe03   :  { %v1253_v17 = vsel %vm596_vm4, %v4383_v14, 0.0  ;;  %v3822_v13 = vpack.c.bf16 %v1430_v12, %v1429_v10  ;;  %v1659_v10 = vld [vmem:[%s4985_s5 + $0x40] sm:$0xff]  ;;  %v1661_v12 = vld [vmem:[%s4985_s5 + $0x50] sm:$0xff] }
 0xe04   :  { %1254 = vadd.xlane.f32.xlu1 %v1253_v17  ;;  %v1250_v18 = vsel %vm46_vm0, %v4385_v15, 0.0  ;;  %v4440_v17 = vpack.i.bf16 %v4144_v1, %v4139_v0 }
 0xe05   :  { %1251 = vadd.xlane.f32.xlu0 %v1250_v18  ;;  %v3348_v18 = vld [vmem:[%s4981_s4 + $0x2] ss:$0 sm:$0xff] }
 0xe15   :  { %3909 = vrot.lane.b32.xlu1 %v3908_v22, %s4070_s27  ;;  %v4450_v22 = vpack.i.bf16 %v4156_v4, %v4149_v2 }
 0xe19   :  { %1281 = vrot.lane.b32.xlu1 %v3343_v23, %s4065_s30 }
 0xe1d   :  { %1286 = vrot.lane.b32.xlu1 %v3343_v23, %s4066_s9 }
 0xe21   :  { %1319 = vrot.lane.b32.xlu1 %v1300_v27, %s4067_s18 }
 0xe25   :  { %1520 = vrot.lane.b32.xlu1 %v3348_v18, %s4065_s30 }
 0xe29   :  { %1558 = vrot.lane.b32.xlu1 %v3348_v18, %s4066_s9  ;;  %v4077_v18 = vmov 3   ;;  %s4085_s9 = smov 7  }
 0xe2d   :  { %1674 = vperm.xlu1 %3924, %v1652_v56  }
 0xe31   :  { %1679 = vperm.xlu1 %3924, %v1653_v58  }
 0xe91   :  { %v1255_v20 = vpop.xlane.xlu1 %1254 }
 0xe92   :  { %v1257_v21 = vmul.f32 0.03125, %v1255_v20  ;;  %v1252_v24 = vpop.xlane.xlu0 %1251 }
 0xe93   :  { %v1256_v25 = vmul.f32 0.03125, %v1252_v24 }
 0xe94   :  { %v1259_v7 = vsub.f32 %v4383_v14, %v1257_v21 }
 0xe95   :  { %v1258_v26 = vsub.f32 %v4385_v15, %v1256_v25  ;;  %v3910_v36 = vpop.permute.xlu1 %3909 }
 0xe96   :  { %v1261_v5 = vmul.f32 %v1259_v7, %v1259_v7  ;;  %v3912_v35 = vunpack.i.h.bf16 %v3910_v36  ;;  %v3911_v37 = vunpack.i.l.bf16 %v3910_v36 }
 0xe97   :  { %v1260_v41 = vmul.f32 %v1258_v26, %v1258_v26 }
 0xe98   :  { %v1265_v40 = vsel %vm596_vm4, %v1261_v5, 0.0  ;;  %v3806_v9 = vpack.c.bf16 %v3912_v35, %v3911_v37 }
 0xe99   :  { %1266 = vadd.xlane.f32.xlu0 %v1265_v40  ;;  %v1262_v63 = vsel %vm46_vm0, %v1260_v41, 0.0  ;;  %v1282_v46 = vpop.permute.xlu1 %1281 }
 0xe9d   :  { %1263 = vadd.xlane.f32.xlu0 %v1262_v63  ;;  %v1287_v52 = vpop.permute.xlu1 %1286 }
 0xea1   :  { %v1320_v0 = vpop.permute.xlu1 %1319 }
 0xeb3   :  { %3904 = vrot.lane.b32.xlu0 %v3903_v6, %s4070_s27 }
 0xeb7   :  { %1317 = vrot.lane.b32.xlu0 %v1296_v28, %s4067_s18  ;;  %s4087_s18 = smov 127  }
 0xebb   :  { %3914 = vrot.lane.b32.xlu0 %v4440_v17, %s4069_s2 }
 0xebf   :  { %3919 = vrot.lane.b32.xlu0 %v4450_v22, %s4069_s2  ;;  %s4086_s2 = smov 9  }
 0xf26   :  { %v1267_v29 = vpop.xlane.xlu0 %1266 }
 0xf27   :  { %v1269_v30 = vmul.f32 0.03125, %v1267_v29 }
 0xf29   :  { %v1271_v31 = vadd.f32 1e-05, %v1269_v30 }
 0xf2a   :  { %v1264_v32 = vpop.xlane.xlu0 %1263 }
 0xf2b   :  { %4007 = vrsqrt.f32 %v1271_v31  ;;  %v1268_v33 = vmul.f32 0.03125, %v1264_v32 }
 0xf2d   :  { %v1270_v34 = vadd.f32 1e-05, %v1268_v33 }
 0xf2e   :  { %v3905_v38 = vpop.permute.xlu0 %3904 }
 0xf2f   :  { %4009 = vrsqrt.f32 %v1270_v34  ;;  %v3907_v39 = vunpack.i.h.bf16 %v3905_v38  ;;  %v3906_v42 = vunpack.i.l.bf16 %v3905_v38 }
 0xf31   :  { %v3802_v43 = vpack.c.bf16 %v3907_v39, %v3906_v42  ;;  %v4989_v42 = vmov 0.0|0.0  }
 0xf32   :  { %v1318_v1 = vpop.permute.xlu0 %1317  ;;  %3826 = vmatprep.subr.bf16.mxu0 %v4989_v42 }
 0xf33   :  { %3803 = vmatprep.subr.bf16.mxu1 %v3802_v43  ;;  %v1322_v23 = vsel %vm1321_vm11, %v1318_v1, %v1320_v0  ;;  %v4537_v0 = vld [vmem:[%s4983_s3 + $0x138] sm:$0xff]  ;;  %v1663_v1 = vld [vmem:[%s4985_s5 + $0x60] sm:$0xff] }
 0xf34   :  { %3805 = vmatpush3.bf16.msra.mxu1 %v3802_v43 }
 0xf35   :  { %v4008_v44 = vpop.eup %4007  ;;  %3807 = vmatprep.subr.bf16.mxu1 %v3806_v9 }
 0xf36   :  { %v1275_v47 = vmul.f32 %v4008_v44, %v1259_v7  ;;  %v3915_v34 = vpop.permute.xlu0 %3914 }
 0xf37   :  { %v3917_v35 = vunpack.i.h.bf16 %v3915_v34  ;;  %v3916_v37 = vunpack.i.l.bf16 %v3915_v34  ;;  %v1644_v34 = vld [vmem:[%s4983_s3 + $0xe8] sm:$0xff] }
 0xf38   :  { %3809 = vmatpush3.bf16.msra.mxu1 %v3806_v9  ;;  %v1285_v50 = vmul.f32 %v1282_v46, %v1275_v47 }
 0xf39   :  { %v4010_v48 = vpop.eup %4009  ;;  %3811 = vmatprep.subr.bf16.mxu1 %v3810_v57  ;;  %v3827_v38 = vpack.c.bf16 %v3917_v35, %v3916_v37  ;;  %v1645_v35 = vld [vmem:[%s4983_s3 + $0xf0] sm:$0xff]  ;;  %v1646_v37 = vld [vmem:[%s4983_s3 + $0xf8] sm:$0xff] }
 0xf3a   :  { %v1274_v49 = vmul.f32 %v4010_v48, %v1258_v26  ;;  %v1290_v54 = vadd.f32 %v1287_v52, %v1285_v50  ;;  %v3920_v39 = vpop.permute.xlu0 %3919 }
 0xf3b   :  { %v3922_v43 = vunpack.i.h.bf16 %v3920_v39  ;;  %v3921_v9 = vunpack.i.l.bf16 %v3920_v39  ;;  %3828 = vmatpush3.bf16.msra.mxu0 %v3827_v38  ;;  %v1647_v38 = vld [vmem:[%s4983_s3 + $0x100] sm:$0xff]  ;;  %v1648_v39 = vld [vmem:[%s4983_s3 + $0x108] sm:$0xff] }
 0xf3c   :  { %v1284_v51 = vmul.f32 %v1282_v46, %v1274_v49  ;;  %3829 = vmatprep.subr.bf16.mxu0 %v4989_v42  ;;  %v1521_v46 = vpop.permute.xlu1 %1520 }
 0xf3d   :  { %v3830_v44 = vpack.c.bf16 %v3922_v43, %v3921_v9  ;;  %v1649_v43 = vld [vmem:[%s4983_s3 + $0x110] sm:$0xff]  ;;  %v1650_v9 = vld [vmem:[%s4983_s3 + $0x118] sm:$0xff] }
 0xf3e   :  { %v1289_v53 = vadd.f32 %v1287_v52, %v1284_v51  ;;  %v1635_v52 = vld [vmem:[%s4983_s3 + $0xa0] sm:$0xff] }
 0xf3f   :  { %3831 = vmatpush3.bf16.msra.mxu0 %v3830_v44 }
 0xf40   :  { %3622 = vmatprep.mubr.msk.f32.mxu1 %vm46_vm0, %v1289_v53  ;;  %v2241_v53 = vld [vmem:[%s4983_s3 + $0x120] sm:$0xff] }
 0xf41   :  { %3623 = vmatmul.mubr.msk.f32.vlgmr.msra.gmra.mrb[14].mxu1 %vm46_vm0, %v1290_v54  ;;  %v2242_v54 = vld [vmem:[%s4983_s3 + $0x128] sm:$0xff] }
 0xf42   :  { %3813 = vmatpush3.bf16.msra.mxu1 %v3810_v57  ;;  %v1651_v57 = vld [vmem:[%s4985_s5] sm:$0xff] }
 0xf43   :  { %3815 = vmatprep.subr.bf16.mxu1 %v3814_v60  ;;  %1669 = vperm.xlu0 %3923, %v1651_v57   ;;  %v4082_v57 = vmov 6  }
 0xf46   :  { %3817 = vmatpush3.bf16.msra.mxu1 %v3814_v60  ;;  %v1655_v60 = vld [vmem:[%s4985_s5 + $0x20] sm:$0xff] }
 0xf47   :  { %3819 = vmatprep.subr.bf16.mxu1 %v3818_v3  ;;  %1684 = vperm.xlu0 %3923, %v1654_v59  }
 0xf48   :  { %1689 = vperm.xlu1 %3924, %v1655_v60  }
 0xf4a   :  { %3821 = vmatpush3.bf16.msra.mxu1 %v3818_v3  ;;  %v1658_v3 = vld [vmem:[%s4985_s5 + $0x38] sm:$0xff] }
 0xf4b   :  { %3823 = vmatprep.subr.bf16.mxu1 %v3822_v13  ;;  %1694 = vperm.xlu0 %3923, %v1656_v61  }
 0xf4c   :  { %1699 = vperm.xlu1 %3924, %v1657_v62  }
 0xf4e   :  { %3825 = vmatpush3.bf16.msra.mxu1 %v3822_v13  ;;  %v4531_v13 = vld [vmem:[%s4983_s3 + $0x130] sm:$0xff] }
 0xf4f   :  { %3681 = vmatprep.subr.mxu1 %v4177_v8  ;;  %1704 = vperm.xlu0 %3923, %v1658_v3  }
 0xf50   :  { %1709 = vperm.xlu1 %3924, %v1659_v10  }
 0xf53   :  { %3927 = vset.pattern.permute.xlu0 %v4077_v18 }
 0xf54   :  { %2435 = vperm.xlu0 %3927, %v4531_v13   ;;  %1719 = vperm.xlu1 %3924, %v1661_v12  }
 0xf58   :  { %1729 = vperm.xlu1 %3924, %v1663_v1  }
 0xfc2   :  { %v1670_v58 = vpop.permute.xlu0 %1669 }
 0xfc6   :  { %v1685_v59 = vpop.permute.xlu0 %1684 }
 0xfca   :  { %v1695_v60 = vpop.permute.xlu0 %1694 }
 0xfce   :  { %v1705_v61 = vpop.permute.xlu0 %1704 }
0x1014   :  { %v3624_v20 = vpop.f32.mrb[14].mxu1 }
0x1015   :  { %v1402_v21 = vadd.f32 %v3624_v20, %v1322_v23  ;;  %v1396_v24 = vpop.f32.mrb[15].mxu1  ;;  %v1665_v20 = vld [vmem:[%s4985_s5 + $0x70] sm:$0xff] }
0x1016   :  { %v1397_v25 = vadd.f32 %v1396_v24, %v1322_v23  ;;  %v4078_v23 = vmov 4   ;;  %1739 = vperm.xlu1 %3924, %v1665_v20   ;;  %v2244_v24 = vld [vmem:[%s4985_s5 + $0x88] sm:$0xff] }
0x1017   :  { %v1406_v7 = vmul.f32 %v1402_v21, %v1402_v21  ;;  %3930 = vset.pattern.permute.xlu0 %v4078_v23 }
0x1018   :  { %v1405_v26 = vmul.f32 %v1397_v25, %v1397_v25  ;;  %2451 = vperm.xlu0 %3930, %v4537_v0  }
0x1019   :  { %v1408_v5 = vmul.f32 %v1406_v7, %v1402_v21  ;;  %v1662_v7 = vld [vmem:[%s4985_s5 + $0x58] sm:$0xff] }
0x101a   :  { %v1407_v40 = vmul.f32 %v1405_v26, %v1397_v25  ;;  %2252 = vperm.xlu1 %3924, %v2244_v24   ;;  %v1664_v26 = vld [vmem:[%s4985_s5 + $0x68] sm:$0xff] }
0x101b   :  { %v1410_v41 = vmul.f32 0.044715, %v1408_v5  ;;  %v4080_v5 = vmov 1  }
0x101c   :  { %v1409_v2 = vmul.f32 0.044715, %v1407_v40  ;;  %v1666_v40 = vld [vmem:[%s4985_s5 + $0x78] sm:$0xff] }
0x101d   :  { %v1412_v4 = vadd.f32 %v1410_v41, %v1402_v21  ;;  %v4081_v41 = vmov 2  }
0x101e   :  { %v1411_v63 = vadd.f32 %v1409_v2, %v1397_v25  ;;  %2367 = vperm.xlu1 %3924, %v4531_v13   ;;  %v1559_v2 = vpop.permute.xlu1 %1558 }
0x101f   :  { %v1414_v6 = vmul.f32 0.7978846, %v1412_v4 }
0x1020   :  { %v1413_v11 = vmul.f32 0.7978846, %v1411_v63 }
0x1021   :  { %4011 = vtanh.f32 %v1414_v6 }
0x1022   :  { %4013 = vtanh.f32 %v1413_v11  ;;  %3925 = vset.pattern.permute.xlu1 %v4080_v5  ;;  %v1675_v44 = vpop.permute.xlu1 %1674 }
0x1023   :  { %2389 = vperm.xlu1 %3925, %v4531_v13  }
0x1027   :  { %3926 = vset.pattern.permute.xlu1 %v4081_v41 }
0x1028   :  { %2412 = vperm.xlu1 %3926, %v4531_v13  }
0x102b   :  { %v4012_v27 = vpop.eup %4011 }
0x102c   :  { %v4014_v28 = vpop.eup %4013  ;;  %v1418_v29 = vadd.f32 1.0, %v4012_v27  ;;  %2416 = vperm.xlu1 %3926, %v4537_v0   ;;  %v1636_v27 = vld [vmem:[%s4983_s3 + $0xa8] sm:$0xff] }
0x102d   :  { %v1417_v30 = vadd.f32 1.0, %v4014_v28  ;;  %v1637_v28 = vld [vmem:[%s4983_s3 + $0xb0] sm:$0xff] }
0x102e   :  { %v1420_v31 = vmul.f32 0.5, %v1418_v29  ;;  %v1638_v29 = vld [vmem:[%s4983_s3 + $0xb8] sm:$0xff] }
0x102f   :  { %v1419_v32 = vmul.f32 0.5, %v1417_v30  ;;  %v1639_v30 = vld [vmem:[%s4983_s3 + $0xc0] sm:$0xff] }
0x1030   :  { %v1422_v36 = vmul.f32 %v1420_v31, %v1402_v21  ;;  %v4079_v21 = vmov 5   ;;  %3928 = vset.pattern.permute.xlu1 %v4077_v18  ;;  %v1640_v31 = vld [vmem:[%s4983_s3 + $0xc8] sm:$0xff] }
0x1031   :  { %v1421_v33 = vmul.f32 %v1419_v32, %v1397_v25  ;;  %3931 = vset.pattern.permute.xlu0 %v4079_v21  ;;  %v1660_v25 = vld [vmem:[%s4985_s5 + $0x48] sm:$0xff]  ;;  %2439 = vperm.xlu1 %3928, %v4537_v0   ;;  %v1641_v32 = vld [vmem:[%s4983_s3 + $0xd0] sm:$0xff] }
0x1032   :  { %2470 = vperm.xlu0 %3931, %v4531_v13  }
0x1033   :  { %3641 = vmatprep.mubr.msk.f32.mxu1 %vm1147_vm10, %v1421_v33  ;;  %v1642_v33 = vld [vmem:[%s4983_s3 + $0xd8] sm:$0xff] }
0x1034   :  { %3642 = vmatmul.mubr.msk.f32.vlgmr.msra.gmra.mrb[16].mxu1 %vm1147_vm10, %v1422_v36  ;;  %v1643_v36 = vld [vmem:[%s4983_s3 + $0xe0] sm:$0xff] }
0x1035   :  { %3682 = vmatpush3.msra.mxu1 %v4177_v8  ;;  %3683 = vmatprep.mubr.msk.f32.mxu1 %vm128_vm1, %v2241_v53 }
0x1036   :  { %3832 = vmatprep.subr.bf16.mxu1 %v4989_v42  ;;  %3932 = vset.pattern.permute.xlu0 %v4076_v55 }
0x1037   :  { %1714 = vperm.xlu0 %3932, %v1660_v25   ;;  %3929 = vset.pattern.permute.xlu1 %v4078_v23  ;;  %v4652_v23 = vpop.permute.xlu0 %2435 }
0x1038   :  { %3684 = vmatmul.mubr.msk.f32.vlgmr.msra.gmra.mrb[18].mxu1 %vm128_vm1, %v2242_v54  ;;  %2447 = vperm.xlu1 %3929, %v4531_v13  }
0x1039   :  { %3690 = vmatprep.mubr.msk.f32.mxu1 %vm4075_vm12, %v4987_v45 }
0x103b   :  { %1724 = vperm.xlu0 %3932, %v1662_v7  }
0x103c   :  { %3933 = vset.pattern.permute.xlu1 %v4079_v21 }
0x103d   :  { %2474 = vperm.xlu1 %3933, %v4537_v0  }
0x103f   :  { %1734 = vperm.xlu0 %3932, %v1664_v26  }
0x1041   :  { %3934 = vset.pattern.permute.xlu1 %v4082_v57 }
0x1042   :  { %2493 = vperm.xlu1 %3934, %v4531_v13  }
0x1043   :  { %1744 = vperm.xlu0 %3932, %v1666_v40  }
0x1046   :  { %3936 = vset.pattern.permute.xlu1 %v4076_v55 }
0x1107   :  { %v3643_v8 = vpop.f32.mrb[16].mxu1 }
0x1108   :  { %v1513_v47 = vadd.f32 %v3643_v8, %v4383_v14  ;;  %v1503_v48 = vpop.f32.mrb[17].mxu1  ;;  %v1680_v8 = vpop.permute.xlu1 %1679 }
0x1109   :  { %v1512_v49 = vadd.f32 %v1503_v48, %v4385_v15 }
0x110a   :  { %v4465_v50 = vadd.f32 %v1521_v46, %v1513_v47 }
0x110b   :  { %v4467_v51 = vadd.f32 %v1521_v46, %v1512_v49  ;;  %v3685_v54 = vpop.f32.mrb[18].mxu1 }
0x110c   :  { %5003 = vst [vmem:[#allocation4_spill] sm:$0xff] %v4465_v50  ;;  %1526 = vst.msk [vmem:[%s4984_s8 + $0x8] sm:$0xf] %vm596_vm4, %v4465_v50  ;;  %v1690_v46 = vpop.permute.xlu1 %1689  ;;  %v4650_v12 = vpop.f32.mrb[19].mxu1 }
0x110d   :  { %1525 = vst.msk [vmem:[%s4984_s8] sm:$0xff] %vm46_vm0, %v4467_v51  ;;  %v1528_v14 = vrot.slane %v4467_v51, 5 }
0x110f   :  { %v1531_v15 = vsel %vm1530_vm13, %v4467_v51, %v1528_v14 }
0x1110   :  { %3653 = vmatmul.mubr.msk.f32.vlgmr.msra.gmra.mrb[12].mxu0 %vm46_vm0, %v1531_v15  ;;  %v1700_v47 = vpop.permute.xlu1 %1699  ;;  %v2243_v15 = vld [vmem:[%s4985_s5 + $0x80] sm:$0xff] }
0x1111   :  { %3657 = vmatprep.mubr.msk.f32.mxu0 %vm504_vm3, %v1635_v52  ;;  %2247 = vperm.xlu0 %3932, %v2243_v15  }
0x1114   :  { %v4633_v48 = vpop.permute.xlu1 %1709 }
0x1115   :  { %2372 = vperm.xlu0 %3932, %v4537_v0  }
0x1118   :  { %v4635_v49 = vpop.permute.xlu1 %1719 }
0x111c   :  { %v4637_v14 = vpop.permute.xlu1 %1729 }
0x1120   :  { %v4642_v52 = vpop.permute.xlu1 %1739 }
0x1124   :  { %v2253_v53 = vpop.permute.xlu1 %2252 }
0x1125   :  { %v4645_v56 = vadd.f32 %v3685_v54, %v2253_v53 }
0x11e3   :  { %v1630_v4 = vpop.f32.mrb[12].mxu0 }
0x11e4   :  { %v1631_v63 = vadd.f32 %v1630_v4, %v1559_v2  ;;  %v3654_v6 = vpop.f32.mrb[13].mxu0  ;;  %v4654_v4 = vpop.permute.xlu0 %2451 }
0x11e6   :  { %v1634_v11 = vmax.f32 %v1631_v63, 0.0 }
0x11e8   :  { %3655 = vmatprep.subr.msk.mxu0 %vm504_vm3, %v1634_v11 }
0x11e9   :  { %3656 = vmatpush3.xpose.msk.msra.mxu0 %vm504_vm3, %v1634_v11 }
0x11ec   :  { %3658 = vmatmul.mubr.msk.f32.vlgmr.msra.gmra.mrb[14].mxu0 %vm504_vm3, %v1636_v27 }
0x11ed   :  { %3660 = vmatprep.mubr.msk.f32.mxu0 %vm504_vm3, %v1637_v28 }
0x11f0   :  { %3661 = vmatmul.mubr.msk.f32.gmra.mrb[16].mxu0 %vm504_vm3, %v1638_v29 }
0x11f1   :  { %3663 = vmatprep.mubr.msk.f32.mxu0 %vm504_vm3, %v1639_v30 }
0x11f4   :  { %3664 = vmatmul.mubr.msk.f32.gmra.mrb[18].mxu0 %vm504_vm3, %v1640_v31 }
0x11f5   :  { %3666 = vmatprep.mubr.msk.f32.mxu0 %vm504_vm3, %v1641_v32 }
0x11f8   :  { %3667 = vmatmul.mubr.msk.f32.gmra.mrb[20].mxu0 %vm504_vm3, %v1642_v33  ;;  %v4656_v33 = vpop.permute.xlu0 %2470 }
0x11f9   :  { %3669 = vmatprep.mubr.msk.f32.mxu0 %vm504_vm3, %v1643_v36 }
0x11fc   :  { %3670 = vmatmul.mubr.msk.f32.gmra.mrb[22].mxu0 %vm504_vm3, %v1644_v34 }
0x11fd   :  { %3672 = vmatprep.mubr.msk.f32.mxu0 %vm504_vm3, %v1645_v35 }
0x1200   :  { %3673 = vmatmul.mubr.msk.f32.gmra.mrb[24].mxu0 %vm504_vm3, %v1646_v37 }
0x1201   :  { %3675 = vmatprep.mubr.msk.f32.mxu0 %vm504_vm3, %v1647_v38 }
0x1204   :  { %3676 = vmatmul.mubr.msk.f32.gmra.mrb[26].mxu0 %vm504_vm3, %v1648_v39 }
0x1205   :  { %3678 = vmatprep.mubr.msk.f32.mxu0 %vm504_vm3, %v1649_v43 }
0x1208   :  { %3679 = vmatmul.mubr.msk.f32.gmra.mrb[28].mxu0 %vm504_vm3, %v1650_v9 }
0x12bf   :  { %v3659_v62 = vpop.f32.mrb[14].mxu0 }
0x12c0   :  { %v1870_v3 = vadd.f32 %v3659_v62, %v1675_v44  ;;  %v1864_v10 = vpop.f32.mrb[15].mxu0 }
0x12c1   :  { %v1865_v18 = vadd.f32 %v1864_v10, %v1670_v58  ;;  %v1715_v58 = vpop.permute.xlu0 %1714 }
0x12c2   :  { %v1944_v1 = vmul.f32 0.5, %v1870_v3 }
0x12c3   :  { %v1943_v20 = vmul.f32 0.5, %v1865_v18  ;;  %v3662_v21 = vpop.f32.mrb[16].mxu0 }
0x12c4   :  { %4015 = vtanh.f32 %v1944_v1  ;;  %v1880_v24 = vadd.f32 %v3662_v21, %v1685_v59  ;;  %v1874_v25 = vpop.f32.mrb[17].mxu0 }
0x12c5   :  { %4017 = vtanh.f32 %v1943_v20  ;;  %v1875_v7 = vadd.f32 %v1874_v25, %v1680_v8 }
0x12c6   :  { %v1946_v26 = vmul.f32 0.5, %v1880_v24 }
0x12c7   :  { %v1945_v40 = vmul.f32 0.5, %v1875_v7  ;;  %v3665_v41 = vpop.f32.mrb[18].mxu0 }
0x12c8   :  { %4019 = vtanh.f32 %v1946_v26  ;;  %v1884_v2 = vpop.f32.mrb[19].mxu0  ;;  %v1890_v29 = vadd.f32 %v3665_v41, %v1695_v60 }
0x12c9   :  { %v1885_v63 = vadd.f32 %v1884_v2, %v1690_v46  ;;  %4021 = vtanh.f32 %v1945_v40 }
0x12ca   :  { %v1948_v9 = vmul.f32 0.5, %v1890_v29 }
0x12cb   :  { %v1947_v6 = vmul.f32 0.5, %v1885_v63  ;;  %v3668_v11 = vpop.f32.mrb[20].mxu0 }
0x12cc   :  { %v1900_v27 = vadd.f32 %v3668_v11, %v1705_v61  ;;  %v1894_v28 = vpop.f32.mrb[21].mxu0 }
0x12cd   :  { %4023 = vtanh.f32 %v1947_v6  ;;  %v1895_v30 = vadd.f32 %v1894_v28, %v1700_v47  ;;  %v1725_v28 = vpop.permute.xlu0 %1724 }
0x12ce   :  { %v4016_v31 = vpop.eup %4015  ;;  %v1950_v32 = vmul.f32 0.5, %v1900_v27 }
0x12cf   :  { %v4018_v36 = vpop.eup %4017  ;;  %v1976_v34 = vadd.f32 1.0, %v4016_v31  ;;  %v1949_v35 = vmul.f32 0.5, %v1895_v30  ;;  %v3671_v37 = vpop.f32.mrb[22].mxu0 }
0x12d0   :  { %v1975_v38 = vadd.f32 1.0, %v4018_v36  ;;  %4025 = vtanh.f32 %v1950_v32  ;;  %v1904_v39 = vpop.f32.mrb[23].mxu0  ;;  %v1910_v18 = vadd.f32 %v3671_v37, %v1715_v58 }
0x12d1   :  { %v1992_v43 = vmul.f32 0.5, %v1976_v34  ;;  %4027 = vtanh.f32 %v1949_v35  ;;  %v1905_v11 = vadd.f32 %v1904_v39, %v4633_v48 }
0x12d2   :  { %v4020_v44 = vpop.eup %4019  ;;  %v1991_v8 = vmul.f32 0.5, %v1975_v38  ;;  %4029 = vtanh.f32 %v1948_v9  ;;  %v1952_v41 = vmul.f32 0.5, %v1910_v18 }
0x12d3   :  { %v1978_v46 = vadd.f32 1.0, %v4020_v44  ;;  %v3674_v15 = vpop.f32.mrb[24].mxu0  ;;  %v2008_v53 = vmul.f32 2.0, %v1992_v43  ;;  %v4022_v59 = vpop.eup %4021  ;;  %v1951_v37 = vmul.f32 0.5, %v1905_v11 }
0x12d4   :  { %v1914_v47 = vpop.f32.mrb[25].mxu0  ;;  %v2007_v54 = vmul.f32 2.0, %v1991_v8  ;;  %v1977_v1 = vadd.f32 1.0, %v4022_v59  ;;  %4031 = vtanh.f32 %v1952_v41  ;;  %v1920_v34 = vadd.f32 %v3674_v15, %v1725_v28  ;;  %v1735_v44 = vpop.permute.xlu0 %1734 }
0x12d5   :  { %v3369_v60 = vadd.f32 -1.0, %v2008_v53  ;;  %v1994_v61 = vmul.f32 0.5, %v1978_v46  ;;  %4033 = vtanh.f32 %v1951_v37  ;;  %v1915_v53 = vadd.f32 %v1914_v47, %v4635_v49 }
0x12d6   :  { %v3368_v62 = vadd.f32 -1.0, %v2007_v54  ;;  %v1993_v2 = vmul.f32 0.5, %v1977_v1  ;;  %v1954_v39 = vmul.f32 0.5, %v1920_v34 }
0x12d7   :  { %v4024_v3 = vpop.eup %4023  ;;  %2047 = vperm.xlu0 %3932, %v3369_v60   ;;  %v3677_v10 = vpop.f32.mrb[26].mxu0  ;;  %v2010_v25 = vmul.f32 2.0, %v1994_v61  ;;  %v1953_v61 = vmul.f32 0.5, %v1915_v53 }
0x12d8   :  { %v1979_v20 = vadd.f32 1.0, %v4024_v3  ;;  %v4658_v21 = vpop.f32.mrb[27].mxu0  ;;  %2042 = vperm.xlu1 %3936, %v3368_v62   ;;  %v2009_v36 = vmul.f32 2.0, %v1993_v2  ;;  %4035 = vtanh.f32 %v1954_v39  ;;  %v1930_v59 = vadd.f32 %v3677_v10, %v1735_v44 }
0x12d9   :  { %v3371_v27 = vadd.f32 -1.0, %v2010_v25  ;;  %4037 = vtanh.f32 %v1953_v61  ;;  %v1925_v53 = vadd.f32 %v4658_v21, %v4637_v14 }
0x12da   :  { %v4026_v24 = vpop.eup %4025  ;;  %v1995_v7 = vmul.f32 0.5, %v1979_v20  ;;  %v3370_v48 = vadd.f32 -1.0, %v2009_v36  ;;  %v1956_v1 = vmul.f32 0.5, %v1930_v59 }
0x12db   :  { %v1982_v26 = vadd.f32 1.0, %v4026_v24  ;;  %3935 = vset.pattern.permute.xlu0 %v4080_v5  ;;  %v3680_v40 = vpop.f32.mrb[28].mxu0  ;;  %v4028_v6 = vpop.eup %4027  ;;  %v1955_v59 = vmul.f32 0.5, %v1925_v53 }
0x12dc   :  { %2146 = vperm.xlu0 %3935, %v3369_v60   ;;  %v1934_v63 = vpop.f32.mrb[29].mxu0  ;;  %3937 = vset.pattern.permute.xlu1 %v4080_v5  ;;  %v4030_v29 = vpop.eup %4029  ;;  %v2011_v31 = vmul.f32 2.0, %v1995_v7  ;;  %v1981_v32 = vadd.f32 1.0, %v4028_v6  ;;  %4039 = vtanh.f32 %v1956_v1 }
0x12dd   :  { %2142 = vperm.xlu1 %3937, %v3368_v62   ;;  %v1998_v30 = vmul.f32 0.5, %v1982_v26  ;;  %v1980_v35 = vadd.f32 1.0, %v4030_v29  ;;  %v1745_v60 = vpop.permute.xlu0 %1744  ;;  %v1935_v26 = vadd.f32 %v1934_v63, %v4642_v52 }
0x12de   :  { %v3372_v38 = vadd.f32 -1.0, %v2011_v31  ;;  %v1997_v9 = vmul.f32 0.5, %v1981_v32  ;;  %v4032_v15 = vpop.eup %4031  ;;  %v1940_v20 = vadd.f32 %v3680_v40, %v1745_v60 }
0x12df   :  { %v2014_v43 = vmul.f32 2.0, %v1998_v30  ;;  %v1996_v8 = vmul.f32 0.5, %v1980_v35  ;;  %v1984_v62 = vadd.f32 1.0, %v4032_v15  ;;  %v4034_v49 = vpop.eup %4033  ;;  %v1957_v2 = vmul.f32 0.5, %v1935_v26 }
0x12e0   :  { %2154 = vperm.xlu0 %3935, %v3371_v27   ;;  %v2013_v54 = vmul.f32 2.0, %v1997_v9  ;;  %v1958_v10 = vmul.f32 0.5, %v1940_v20  ;;  %v1983_v25 = vadd.f32 1.0, %v4034_v49 }
0x12e1   :  { %3938 = vset.pattern.permute.xlu1 %v4076_v55  ;;  %v3375_v46 = vadd.f32 -1.0, %v2014_v43  ;;  %v2012_v58 = vmul.f32 2.0, %v1996_v8  ;;  %v2000_v47 = vmul.f32 0.5, %v1984_v62 }
0x12e2   :  { %2057 = vperm.xlu1 %3938, %v3371_v27   ;;  %v3374_v3 = vadd.f32 -1.0, %v2013_v54  ;;  %v4036_v24 = vpop.eup %4035  ;;  %4041 = vtanh.f32 %v1958_v10  ;;  %v1999_v41 = vmul.f32 0.5, %v1983_v25 }
0x12e3   :  { %v3373_v18 = vadd.f32 -1.0, %v2012_v58  ;;  %v2016_v7 = vmul.f32 2.0, %v2000_v47  ;;  %v1986_v40 = vadd.f32 1.0, %v4036_v24  ;;  %v4038_v6 = vpop.eup %4037  ;;  %4043 = vtanh.f32 %v1957_v2 }
0x12e4   :  { %3942 = vset.pattern.permute.xlu0 %v4076_v55  ;;  %v2015_v27 = vmul.f32 2.0, %v1999_v41  ;;  %v1985_v29 = vadd.f32 1.0, %v4038_v6  ;;  %v4084_v58 = vmov 8   ;;  %4045 = vtanh.f32 %v1955_v59 }
0x12e5   :  { %2062 = vperm.xlu0 %3942, %v3372_v38   ;;  %v2002_v11 = vmul.f32 0.5, %v1986_v40 }
0x12e6   :  { %2052 = vperm.xlu1 %3938, %v3370_v48   ;;  %v4040_v28 = vpop.eup %4039  ;;  %v3376_v30 = vadd.f32 -1.0, %v2015_v27  ;;  %v2001_v32 = vmul.f32 0.5, %v1985_v29  ;;  %v4715_v27 = vld [vmem:[%s4982_s6 + $0x28] ss:$0 sm:$0xff] }
0x12e7   :  { %v2018_v52 = vmul.f32 2.0, %v2002_v11  ;;  %v1988_v63 = vadd.f32 1.0, %v4040_v28  ;;  %v4720_v28 = vld [vmem:[%s4982_s6 + $0x20] ss:$0 sm:$0xff] }
0x12e8   :  { %v2017_v37 = vmul.f32 2.0, %v2001_v32 }
0x12e9   :  { %2077 = vperm.xlu0 %3942, %v3375_v46   ;;  %v3379_v36 = vadd.f32 -1.0, %v2018_v52  ;;  %v2004_v34 = vmul.f32 0.5, %v1988_v63 }
0x12ea   :  { %3939 = vset.pattern.permute.xlu1 %v4080_v5  ;;  %v3378_v39 = vadd.f32 -1.0, %v2017_v37 }
0x12eb   :  { %2150 = vperm.xlu1 %3939, %v3370_v48   ;;  %v2020_v9 = vmul.f32 2.0, %v2004_v34 }
0x12ec   :  { %v4042_v31 = vpop.eup %4041 }
0x12ed   :  { %3944 = vset.pattern.permute.xlu0 %v4080_v5  ;;  %v1990_v35 = vadd.f32 1.0, %v4042_v31  ;;  %v4044_v43 = vpop.eup %4043  ;;  %v3381_v8 = vadd.f32 -1.0, %v2020_v9 }
0x12ee   :  { %2166 = vperm.xlu0 %3944, %v3374_v3   ;;  %v1989_v44 = vadd.f32 1.0, %v4044_v43  ;;  %v4046_v14 = vpop.eup %4045 }
0x12ef   :  { %3940 = vset.pattern.permute.xlu1 %v4076_v55  ;;  %v2006_v48 = vmul.f32 0.5, %v1990_v35 }
0x12f0   :  { %2067 = vperm.xlu1 %3940, %v3373_v18   ;;  %v2005_v54 = vmul.f32 0.5, %v1989_v44 }
0x12f2   :  { %3945 = vset.pattern.permute.xlu0 %v4082_v57  ;;  %v3377_v57 = vadd.f32 -1.0, %v2016_v7  ;;  %v2021_v60 = vmul.f32 2.0, %v2005_v54  ;;  %v2248_v7 = vpop.permute.xlu0 %2247 }
0x12f3   :  { %2497 = vperm.xlu0 %3945, %v4537_v0  }
0x12f4   :  { %3941 = vset.pattern.permute.xlu1 %v4080_v5  ;;  %v3382_v61 = vadd.f32 -1.0, %v2021_v60 }
0x12f5   :  { %2162 = vperm.xlu1 %3941, %v3373_v18  }
0x12f6   :  { %v4710_v26 = vpop.permute.xlu0 %2372 }
0x12f7   :  { %3946 = vset.pattern.permute.xlu0 %v4080_v5 }
0x12f8   :  { %2393 = vperm.xlu0 %3946, %v4537_v0  }
0x12f9   :  { %2158 = vperm.xlu1 %3941, %v3372_v38   ;;  %v4083_v38 = vmov 7  }
0x12fc   :  { %2178 = vperm.xlu0 %3946, %v3377_v57  }
0x12fd   :  { %2170 = vperm.xlu1 %3941, %v3375_v46   ;;  %v2022_v46 = vmul.f32 2.0, %v2006_v48 }
0x12ff   :  { %v3383_v15 = vadd.f32 -1.0, %v2022_v46 }
0x1300   :  { %3950 = vset.pattern.permute.xlu0 %v4076_v55 }
0x1301   :  { %2082 = vperm.xlu0 %3950, %v3376_v30   ;;  %3943 = vset.pattern.permute.xlu1 %v4076_v55 }
0x1302   :  { %2072 = vperm.xlu1 %3943, %v3374_v3  }
0x1305   :  { %3953 = vset.pattern.permute.xlu0 %v4080_v5 }
0x1306   :  { %2186 = vperm.xlu0 %3953, %v3379_v36   ;;  %3947 = vset.pattern.permute.xlu1 %v4083_v38 }
0x1307   :  { %2516 = vperm.xlu1 %3947, %v4531_v13  }
0x130a   :  { %3954 = vset.pattern.permute.xlu0 %v4076_v55 }
0x130b   :  { %2092 = vperm.xlu0 %3954, %v3378_v39   ;;  %2520 = vperm.xlu1 %3947, %v4537_v0  }
0x130f   :  { %2107 = vperm.xlu0 %3954, %v3381_v8   ;;  %3948 = vset.pattern.permute.xlu1 %v4084_v58 }
0x1310   :  { %2539 = vperm.xlu1 %3948, %v4531_v13   ;;  %v1987_v13 = vadd.f32 1.0, %v4046_v14 }
0x1312   :  { %v2003_v21 = vmul.f32 0.5, %v1987_v13 }
0x1313   :  { %2117 = vperm.xlu0 %3954, %v3383_v15  }
0x1314   :  { %2543 = vperm.xlu1 %3948, %v4537_v0   ;;  %v4691_v0 = vpop.permute.xlu1 %2367  ;;  %v2019_v62 = vmul.f32 2.0, %v2003_v21 }
0x1316   :  { %v3380_v3 = vadd.f32 -1.0, %v2019_v62 }
0x1317   :  { %3959 = vset.pattern.permute.xlu0 %v4080_v5 }
0x1318   :  { %2198 = vperm.xlu0 %3959, %v3382_v61   ;;  %3949 = vset.pattern.permute.xlu1 %v4076_v55  ;;  %v4693_v18 = vpop.permute.xlu1 %2389 }
0x1319   :  { %2087 = vperm.xlu1 %3949, %v3377_v57  }
0x131c   :  { %3960 = vset.pattern.permute.xlu0 %v4076_v55  ;;  %v4697_v1 = vpop.permute.xlu1 %2412 }
0x131d   :  { %3951 = vset.pattern.permute.xlu1 %v4080_v5 }
0x131e   :  { %2174 = vperm.xlu1 %3951, %v3376_v30  }
0x1320   :  { %v4699_v20 = vpop.permute.xlu1 %2416 }
0x1322   :  { %3952 = vset.pattern.permute.xlu1 %v4076_v55 }
0x1323   :  { %2097 = vperm.xlu1 %3952, %v3379_v36  }
0x1324   :  { %v4702_v49 = vpop.permute.xlu1 %2439 }
0x1327   :  { %3955 = vset.pattern.permute.xlu1 %v4080_v5 }
0x1328   :  { %2182 = vperm.xlu1 %3955, %v3378_v39   ;;  %v4704_v47 = vpop.permute.xlu1 %2447 }
0x132c   :  { %2194 = vperm.xlu1 %3955, %v3381_v8   ;;  %v4706_v10 = vpop.permute.xlu1 %2474 }
0x1330   :  { %3956 = vset.pattern.permute.xlu1 %v4076_v55  ;;  %v4708_v24 = vpop.permute.xlu1 %2493 }
0x1331   :  { %2102 = vperm.xlu1 %3956, %v3380_v3  }
0x1335   :  { %3957 = vset.pattern.permute.xlu1 %v4080_v5 }
0x1336   :  { %2190 = vperm.xlu1 %3957, %v3380_v3  }
0x133a   :  { %2202 = vperm.xlu1 %3957, %v3383_v15  }
0x133e   :  { %3958 = vset.pattern.permute.xlu1 %v4076_v55 }
0x133f   :  { %2112 = vperm.xlu1 %3958, %v3382_v61  }
0x1356   :  { %v2048_v41 = vpop.permute.xlu0 %2047 }
0x1357   :  { %v2043_v25 = vpop.permute.xlu1 %2042  ;;  %v2125_v30 = vmul.f32 %v4720_v28, %v2048_v41 }
0x1358   :  { %v2124_v14 = vmul.f32 %v4720_v28, %v2043_v25 }
0x135b   :  { %v2147_v2 = vpop.permute.xlu0 %2146 }
0x135c   :  { %v2143_v5 = vpop.permute.xlu1 %2142  ;;  %v2210_v63 = vmul.f32 %v4715_v27, %v2147_v2 }
0x135d   :  { %v2209_v54 = vmul.f32 %v4715_v27, %v2143_v5 }
0x135e   :  { %v2226_v36 = vadd.f32 %v2210_v63, %v2125_v30 }
0x135f   :  { %v2155_v55 = vpop.permute.xlu0 %2154  ;;  %v2225_v5 = vadd.f32 %v2209_v54, %v2124_v14 }
0x1360   :  { %v2212_v38 = vmul.f32 %v4715_v27, %v2155_v55  ;;  %v2337_v48 = vadd.f32 1.0, %v2226_v36 }
0x1361   :  { %v2058_v40 = vpop.permute.xlu1 %2057  ;;  %v2336_v63 = vadd.f32 1.0, %v2225_v5 }
0x1362   :  { %v2127_v34 = vmul.f32 %v4720_v28, %v2058_v40  ;;  %v2343_v58 = vmul.f32 %v2337_v48, %v4645_v56 }
0x1364   :  { %v2063_v29 = vpop.permute.xlu0 %2062  ;;  %v2228_v39 = vadd.f32 %v2212_v38, %v2127_v34  ;;  %v2551_v34 = vld [vmem:[%s4985_s5 + $0x98] sm:$0xff]  ;;  %v4059_v38 = vld [vmem:[%s4981_s4 + $0x2] ss:$0 sm:$0xff] }
0x1365   :  { %v2053_v57 = vpop.permute.xlu1 %2052  ;;  %v2128_v2 = vmul.f32 %v4720_v28, %v2063_v29 }
0x1366   :  { %v2347_v59 = vmul.f32 %v4645_v56, %v2228_v39  ;;  %v2126_v55 = vmul.f32 %v4720_v28, %v2053_v57 }
0x1368   :  { %v2078_v37 = vpop.permute.xlu0 %2077 }
0x1369   :  { %v2131_v44 = vmul.f32 %v4720_v28, %v2078_v37 }
0x136a   :  { %v2151_v6 = vpop.permute.xlu1 %2150 }
0x136b   :  { %v2211_v13 = vmul.f32 %v4715_v27, %v2151_v6  ;;  %v2328_v6 = vadd.f32 %v4650_v12, %v2248_v7  ;;  %v2550_v12 = vld [vmem:[%s4985_s5 + $0x90] sm:$0xff] }
0x136d   :  { %v2167_v15 = vpop.permute.xlu0 %2166  ;;  %v2342_v57 = vmul.f32 %v2336_v63, %v2328_v6 }
0x136e   :  { %v2215_v62 = vmul.f32 %v4715_v27, %v2167_v15 }
0x136f   :  { %v2068_v11 = vpop.permute.xlu1 %2067 }
0x1370   :  { %v2129_v35 = vmul.f32 %v4720_v28, %v2068_v11 }
0x1372   :  { %v4792_v39 = vpop.permute.xlu0 %2497 }
0x1374   :  { %v2163_v52 = vpop.permute.xlu1 %2162 }
0x1375   :  { %v2214_v31 = vmul.f32 %v4715_v27, %v2163_v52  ;;  %v2227_v52 = vadd.f32 %v2211_v13, %v2126_v55  ;;  %v3389_v55 = vld [vmem:[%s4982_s6 + $0x31] ss:$0 sm:$0xff] }
0x1377   :  { %v2230_v43 = vadd.f32 %v2214_v31, %v2129_v35  ;;  %v2346_v31 = vmul.f32 %v2328_v6, %v2227_v52  ;;  %v2581_v35 = vld [vmem:[%s4985_s5 + $0xa0] sm:$0xff] }
0x1378   :  { %v2159_v32 = vpop.permute.xlu1 %2158 }
0x1379   :  { %v2339_v46 = vmul.f32 0.5, %v2230_v43  ;;  %v2213_v40 = vmul.f32 %v4715_v27, %v2159_v32 }
0x137b   :  { %v2345_v3 = vadd.f32 %v2343_v58, %v2339_v46  ;;  %v2229_v25 = vadd.f32 %v2213_v40, %v2128_v2 }
0x137c   :  { %v2171_v9 = vpop.permute.xlu1 %2170 }
0x137d   :  { %v2216_v8 = vmul.f32 %v4715_v27, %v2171_v9  ;;  %v2338_v32 = vmul.f32 0.5, %v2229_v25  ;;  %v3388_v25 = vld [vmem:[%s4982_s6 + $0x30] ss:$0 sm:$0xff] }
0x137f   :  { %v2232_v53 = vadd.f32 %v2216_v8, %v2131_v44  ;;  %v2344_v36 = vadd.f32 %v2342_v57, %v2338_v32  ;;  %v3391_v57 = vld [vmem:[%s4982_s6 + $0x33] ss:$0 sm:$0xff] }
0x1381   :  { %v2341_v60 = vmul.f32 0.5, %v2232_v53  ;;  %v2073_v61 = vpop.permute.xlu1 %2072 }
0x1382   :  { %v2130_v21 = vmul.f32 %v4720_v28, %v2073_v61 }
0x1383   :  { %v2349_v41 = vadd.f32 %v2347_v59, %v2341_v60 }
0x1384   :  { %v2231_v11 = vadd.f32 %v2215_v62, %v2130_v21 }
0x1385   :  { %v4740_v56 = vmax.f32 %v2345_v3, %v2349_v41 }
0x1386   :  { %v2340_v30 = vmul.f32 0.5, %v2231_v11  ;;  %v4776_v37 = vpop.permute.xlu1 %2516 }
0x1387   :  { %2402 = vrot.lane.b32.xlu1 %v4740_v56, %s4085_s9  ;;  %2356 = vrot.lane.b32.xlu0 %v4740_v56, %s4086_s2 }
0x1388   :  { %v2348_v29 = vadd.f32 %v2346_v31, %v2340_v30  ;;  %v3390_v31 = vld [vmem:[%s4982_s6 + $0x32] ss:$0 sm:$0xff] }
0x138a   :  { %v4753_v7 = vmax.f32 %v2344_v36, %v2348_v29 }
0x138b   :  { %2460 = vrot.lane.b32.xlu1 %v4740_v56, %s4087_s18  ;;  %2379 = vrot.lane.b32.xlu0 %v4740_v56, %s4064_s29 }
0x138f   :  { %2483 = vrot.lane.b32.xlu1 %v4740_v56, %s4088_s20  ;;  %2425 = vrot.lane.b32.xlu0 %v4740_v56, %s4089_s21 }
0x1393   :  { %2554 = vperm.xlu0 %3960, %v2550_v12   ;;  %2354 = vrot.lane.b32.xlu1 %v4753_v7, %s4086_s2 }
0x1397   :  { %2458 = vrot.lane.b32.xlu0 %v4753_v7, %s4087_s18  ;;  %2377 = vrot.lane.b32.xlu1 %v4753_v7, %s4064_s29 }
0x139b   :  { %2481 = vrot.lane.b32.xlu0 %v4753_v7, %s4088_s20  ;;  %2400 = vrot.lane.b32.xlu1 %v4753_v7, %s4085_s9 }
0x139f   :  { %2504 = vrot.lane.b32.xlu0 %v4753_v7, %s4063_s24  ;;  %2423 = vrot.lane.b32.xlu1 %v4753_v7, %s4089_s21 }
0x13a3   :  { %2529 = vrot.lane.b32.xlu0 %v4740_v56, %s4090_s25  ;;  %2506 = vrot.lane.b32.xlu1 %v4740_v56, %s4063_s24 }
0x13a7   :  { %3967 = vrot.lane.b32.xlu0 %v4450_v22, %s4065_s30  ;;  %2559 = vperm.xlu1 %3958, %v2551_v34   ;;  %v4784_v22 = vpop.permute.xlu1 %2520 }
0x13ab   :  { %2584 = vperm.xlu0 %3960, %v2581_v35   ;;  %2527 = vrot.lane.b32.xlu1 %v4753_v7, %s4090_s25  ;;  %v4786_v43 = vpop.permute.xlu1 %2539 }
0x13af   :  { %3962 = vrot.lane.b32.xlu1 %v4440_v17, %s4065_s30  ;;  %v4788_v9 = vpop.permute.xlu1 %2543  ;;  %v2394_v17 = vpop.permute.xlu0 %2393 }
0x13b3   :  { %2673 = vrot.lane.b32.xlu1 %v4059_v38, %s4070_s27  ;;  %v4790_v48 = vpop.permute.xlu1 %2087  ;;  %v2179_v53 = vpop.permute.xlu0 %2178 }
0x13b7   :  { %v4794_v44 = vpop.permute.xlu1 %2174  ;;  %v4802_v15 = vpop.permute.xlu0 %2082 }
0x13bb   :  { %v4796_v8 = vpop.permute.xlu1 %2097  ;;  %v4804_v58 = vpop.permute.xlu0 %2186 }
0x13bf   :  { %v4798_v46 = vpop.permute.xlu1 %2182  ;;  %v4808_v60 = vpop.permute.xlu0 %2092 }
0x13c3   :  { %v4800_v54 = vpop.permute.xlu1 %2194  ;;  %v4812_v14 = vpop.permute.xlu0 %2107 }
0x13c7   :  { %v4806_v59 = vpop.permute.xlu1 %2102  ;;  %v2118_v21 = vpop.permute.xlu0 %2117 }
0x13cb   :  { %v4810_v61 = vpop.permute.xlu1 %2190  ;;  %v4818_v40 = vpop.permute.xlu0 %2198 }
0x13cf   :  { %v4814_v13 = vpop.permute.xlu1 %2202 }
0x13d3   :  { %v4816_v62 = vpop.permute.xlu1 %2112 }
0x13f9   :  { %v2403_v3 = vpop.permute.xlu1 %2402  ;;  %v2357_v5 = vpop.permute.xlu0 %2356 }
0x13fa   :  { %v2364_v63 = vmul.f32 %v3388_v25, %v2357_v5  ;;  %v2410_v12 = vmul.f32 %v3390_v31, %v2403_v3 }
0x13fc   :  { %v2376_v36 = vmul.f32 %v4710_v26, %v2364_v63 }
0x13fd   :  { %v2461_v41 = vpop.permute.xlu1 %2460  ;;  %v2380_v11 = vpop.permute.xlu0 %2379 }
0x13fe   :  { %v2387_v6 = vmul.f32 %v3389_v55, %v2380_v11  ;;  %v2420_v11 = vmul.f32 %v4699_v20, %v2410_v12  ;;  %v2455_v20 = vmul.f32 %v4654_v4, %v4740_v56 }
0x1400   :  { %v2397_v32 = vmul.f32 %v2394_v17, %v2387_v6  ;;  %v3392_v6 = vld [vmem:[%s4982_s6 + $0x35] ss:$0 sm:$0xff] }
0x1401   :  { %v2484_v2 = vpop.permute.xlu1 %2483  ;;  %v2426_v29 = vpop.permute.xlu0 %2425 }
0x1402   :  { %v2399_v35 = vadd.f32 %v2397_v32, %v2376_v36  ;;  %v2433_v38 = vmul.f32 %v3391_v57, %v2426_v29  ;;  %v2468_v29 = vmul.f32 %v3392_v6, %v2461_v41 }
0x1404   :  { %v2422_v45 = vadd.f32 %v2420_v11, %v2399_v35  ;;  %v2443_v42 = vmul.f32 %v4702_v49, %v2433_v38  ;;  %v3393_v49 = vld [vmem:[%s4982_s6 + $0x36] ss:$0 sm:$0xff]  ;;  %v2478_v4 = vmul.f32 %v4706_v10, %v2468_v29  ;;  %v2454_v10 = vmul.f32 %v4704_v47, %v4753_v7 }
0x1405   :  { %v2355_v52 = vpop.permute.xlu1 %2354  ;;  %v2491_v56 = vmul.f32 %v3393_v49, %v2484_v2  ;;  %v2224_v35 = vmul.f32 %v4715_v27, %v4814_v13  ;;  %v2135_v7 = vmul.f32 %v4720_v28, %v4796_v8  ;;  %v2217_v8 = vmul.f32 %v4715_v27, %v4794_v44 }
0x1406   :  { %v2363_v16 = vmul.f32 %v3388_v25, %v2355_v52  ;;  %v2445_v3 = vadd.f32 %v2443_v42, %v2422_v45  ;;  %v3394_v52 = vld [vmem:[%s4982_s6 + $0x37] ss:$0 sm:$0xff]  ;;  %v2223_v44 = vmul.f32 %v4715_v27, %v4818_v40 }
0x1407   :  { %v2501_v12 = vmul.f32 %v4792_v39, %v2491_v56  ;;  %v2136_v56 = vmul.f32 %v4720_v28, %v4806_v59 }
0x1409   :  { %v2378_v30 = vpop.permute.xlu1 %2377 }
0x140a   :  { %v2386_v19 = vmul.f32 %v3389_v55, %v2378_v30  ;;  %v2375_v55 = vmul.f32 %v4691_v0, %v2363_v16  ;;  %v2218_v16 = vmul.f32 %v4715_v27, %v2179_v53  ;;  %v2139_v53 = vmul.f32 %v4720_v28, %v2118_v21 }
0x140c   :  { %v2396_v63 = vmul.f32 %v4693_v18, %v2386_v19  ;;  %v2457_v19 = vadd.f32 %v2455_v20, %v2445_v3  ;;  %v2240_v13 = vadd.f32 %v2224_v35, %v2139_v53 }
0x140d   :  { %v2401_v34 = vpop.permute.xlu1 %2400 }
0x140e   :  { %v2409_v50 = vmul.f32 %v3390_v31, %v2401_v34  ;;  %v2398_v18 = vadd.f32 %v2396_v63, %v2375_v55  ;;  %v2480_v36 = vadd.f32 %v2478_v4, %v2457_v19  ;;  %v2137_v34 = vmul.f32 %v4720_v28, %v4812_v14 }
0x1410   :  { %v2419_v30 = vmul.f32 %v4697_v1, %v2409_v50  ;;  %v2133_v50 = vmul.f32 %v4720_v28, %v4790_v48  ;;  %v3395_v1 = vld [vmem:[%s4982_s6 + $0x38] ss:$0 sm:$0xff]  ;;  %v2222_v48 = vmul.f32 %v4715_v27, %v4800_v54  ;;  %v2503_v11 = vadd.f32 %v2501_v12, %v2480_v36 }
0x1411   :  { %v2424_v17 = vpop.permute.xlu1 %2423 }
0x1412   :  { %v4834_v5 = vpop.permute.xlu0 %2554  ;;  %v2432_v32 = vmul.f32 %v3391_v57, %v2424_v17  ;;  %v2421_v31 = vadd.f32 %v2419_v30, %v2398_v18  ;;  %v2234_v47 = vadd.f32 %v2218_v16, %v2133_v50  ;;  %v2238_v3 = vadd.f32 %v2222_v48, %v2137_v34 }
0x1414   :  { %v2442_v41 = vmul.f32 %v4652_v23, %v2432_v32  ;;  %v2565_v20 = vadd.f32 1.0, %v2234_v47 }
0x1415   :  { %v2507_v45 = vpop.permute.xlu1 %2506 }
0x1416   :  { %v2459_v26 = vpop.permute.xlu0 %2458  ;;  %v2514_v25 = vmul.f32 %v3394_v52, %v2507_v45  ;;  %v2444_v0 = vadd.f32 %v2442_v41, %v2421_v31  ;;  %v2569_v45 = vmul.f32 0.5, %v2240_v13 }
0x1417   :  { %v2467_v2 = vmul.f32 %v3392_v6, %v2459_v26 }
0x1418   :  { %v2524_v23 = vmul.f32 %v4784_v22, %v2514_v25  ;;  %v2220_v22 = vmul.f32 %v4715_v27, %v4804_v58  ;;  %v2456_v14 = vadd.f32 %v2454_v10, %v2444_v0  ;;  %v2132_v58 = vmul.f32 %v4720_v28, %v4802_v15 }
0x1419   :  { %v2477_v21 = vmul.f32 %v4656_v33, %v2467_v2 }
0x141a   :  { %v2482_v42 = vpop.permute.xlu0 %2481  ;;  %v2526_v26 = vadd.f32 %v2524_v23, %v2503_v11  ;;  %v2233_v4 = vadd.f32 %v2217_v8, %v2132_v58  ;;  %v2759_v8 = vld [vmem:[%s4985_s5 + $0xb0] sm:$0xff] }
0x141b   :  { %v2490_v39 = vmul.f32 %v3393_v49, %v2482_v42  ;;  %v2236_v49 = vadd.f32 %v2220_v22, %v2135_v7  ;;  %v2479_v55 = vadd.f32 %v2477_v21, %v2456_v14  ;;  %v2756_v7 = vld [vmem:[%s4983_s3 + $0x90] sm:$0xff] }
0x141c   :  { %v2564_v40 = vadd.f32 1.0, %v2233_v4 }
0x141d   :  { %v2500_v32 = vmul.f32 %v4708_v24, %v2490_v39  ;;  %v2138_v24 = vmul.f32 %v4720_v28, %v4816_v62 }
0x141e   :  { %v2505_v57 = vpop.permute.xlu0 %2504 }
0x141f   :  { %v2513_v6 = vmul.f32 %v3394_v52, %v2505_v57  ;;  %v2221_v52 = vmul.f32 %v4715_v27, %v4810_v61  ;;  %v2502_v19 = vadd.f32 %v2500_v32, %v2479_v55  ;;  %v2134_v57 = vmul.f32 %v4720_v28, %v4808_v60 }
0x1420   :  { %v2239_v16 = vadd.f32 %v2223_v44, %v2138_v24  ;;  %v5007_v55 = vmov 0.0   ;;  %v4062_v44 = vld [vmem:[%s4982_s6] sm:$0xff] }
0x1421   :  { %v2523_v33 = vmul.f32 %v4776_v37, %v2513_v6  ;;  %v2219_v37 = vmul.f32 %v4715_v27, %v4798_v46  ;;  %v2237_v36 = vadd.f32 %v2221_v52, %v2136_v56 }
0x1422   :  { %v2530_v38 = vpop.permute.xlu0 %2529  ;;  %v2568_v23 = vmul.f32 0.5, %v2239_v16 }
0x1423   :  { %v2537_v17 = vmul.f32 %v3395_v1, %v2530_v38  ;;  %v2525_v61 = vadd.f32 %v2523_v33, %v2502_v19  ;;  %v2566_v46 = vmul.f32 0.5, %v2237_v36  ;;  %v3300_v33 = vld [vmem:[%s4985_s5 + $0xb8] sm:$0xff] }
0x1425   :  { %v2547_v54 = vmul.f32 %v4788_v9, %v2537_v17  ;;  %v2567_v9 = vmul.f32 0.5, %v2238_v3  ;;  %v5004_v17 = vld [vmem:[#allocation4_spill] sm:$0xff] }
0x1426   :  { %v2560_v63 = vpop.permute.xlu1 %2559  ;;  %v3968_v48 = vpop.permute.xlu0 %3967  ;;  %v3843_v22 = vpack.c.bf16 %v5004_v17, %v4467_v51 }
0x1427   :  { %v2549_v29 = vadd.f32 %v2547_v54, %v2526_v26  ;;  %v3970_v28 = vunpack.i.h.bf16 %v3968_v48  ;;  %v3969_v60 = vunpack.i.l.bf16 %v3968_v48  ;;  %v4060_v26 = vld [vmem:[%s4980_s0] sm:$0xff] }
0x1429   :  { %v2563_v30 = vadd.f32 %v2560_v63, %v2549_v29  ;;  %v3839_v39 = vpack.c.bf16 %v3970_v28, %v3969_v60  ;;  %v5006_v63 = vmov 0.0|0.0  }
0x142a   :  { %v2528_v42 = vpop.permute.xlu1 %2527  ;;  %v2585_v14 = vpop.permute.xlu0 %2584 }
0x142b   :  { %v2571_v15 = vmul.f32 %v2565_v20, %v2563_v30  ;;  %v2575_v18 = vmul.f32 %v2563_v30, %v2236_v49  ;;  %v2536_v41 = vmul.f32 %v3395_v1, %v2528_v42  ;;  %v2235_v1 = vadd.f32 %v2219_v37, %v2134_v57  ;;  %v2758_v49 = vld [vmem:[%s4985_s5 + $0xa8] sm:$0xff] }
0x142d   :  { %v2573_v25 = vadd.f32 %v2571_v15, %v2567_v9  ;;  %v2577_v31 = vadd.f32 %v2575_v18, %v2569_v45  ;;  %v2546_v62 = vmul.f32 %v4786_v43, %v2536_v41  ;;  %v4061_v18 = vld [vmem:[%s4982_s6 + $0x8] sm:$0xf] }
0x142e   :  { %v3963_v27 = vpop.permute.xlu1 %3962 }
0x142f   :  { %v2579_v50 = vmax.f32 %v2573_v25, %v2577_v31  ;;  %v2548_v0 = vadd.f32 %v2546_v62, %v2525_v61  ;;  %v3965_v2 = vunpack.i.h.bf16 %v3963_v27  ;;  %v3964_v34 = vunpack.i.l.bf16 %v3963_v27 }
0x1431   :  { %v2562_v12 = vadd.f32 %v4834_v5, %v2548_v0  ;;  %v3835_v38 = vpack.c.bf16 %v3965_v2, %v3964_v34  ;;  %v2580_v5 = vld [vmem:[%s4983_s3 + $0x140] sm:$0xff] }
0x1432   :  { %v2674_v13 = vpop.permute.xlu1 %2673 }
0x1433   :  { %v2570_v59 = vmul.f32 %v2564_v40, %v2562_v12  ;;  %v2574_v10 = vmul.f32 %v2562_v12, %v2235_v1 }
0x1435   :  { %v2572_v53 = vadd.f32 %v2570_v59, %v2566_v46  ;;  %v2576_v43 = vadd.f32 %v2574_v10, %v2568_v23 }
0x1437   :  { %v2578_v35 = vmax.f32 %v2572_v53, %v2576_v43 }
0x1439   :  { %v3833_v11 = vpack.c.bf16 %v2579_v50, %v2578_v35 }
0x143b   :  { %3834 = vmatpush3.bf16.msra.mxu1 %v3833_v11 }
0x143c   :  { %3836 = vmatprep.subr.bf16.mxu1 %v3835_v38 }
0x143e   :  { %3691 = vmatmul.mubr.msk.f32.vlgmr.msra.gmra.mrb[20].mxu1 %vm504_vm3, %v2580_v5 }
0x143f   :  { %3838 = vmatpush3.bf16.msra.mxu1 %v3835_v38  ;;  %3701 = vmatprep.mubr.msk.f32.mxu1 %vm46_vm0, %v4467_v51  ;;  %v2757_v51 = vld [vmem:[%s4983_s3 + $0x98] sm:$0xff] }
0x1440   :  { %3840 = vmatprep.subr.bf16.mxu1 %v3839_v39 }
0x1443   :  { %3842 = vmatpush3.bf16.msra.mxu1 %v3839_v39 }
0x1444   :  { %3845 = vmatprep.subr.msk.bf16.mxu1 %vm4297_vm5, %v3843_v22 }
0x1446   :  { %3702 = vmatmul.mubr.msk.f32.vlgmr.msra.gmra.mrb[22].mxu1 %vm46_vm0, %v5004_v17 }
0x1447   :  { %3708 = vmatprep.mubr.msk.f32.mxu1 %vm46_vm0, %v2756_v7 }
0x144c   :  { %3848 = vmatpush3.bf16.xpose.msk.msra.mxu1 %vm4297_vm5, %v3843_v22 }
0x1453   :  { %3709 = vmatmul.mubr.msk.f32.vlgmr.msra.gmra.mrb[24].mxu1 %vm46_vm0, %v2757_v51 }
0x1511   :  { %v2656_v21 = vpop.f32.mrb[20].mxu1 }
0x1512   :  { %v2657_v6 = vadd.f32 %v2656_v21, %v2585_v14  ;;  %v3692_v54 = vpop.f32.mrb[21].mxu1 }
0x1514   :  { %v4921_v3 = vadd.f32 %v4060_v26, %v2657_v6 }
0x1516   :  { %3711 = vmatprep.subr.mxu1 %v4921_v3  ;;  %3723 = vmatprep.subr.mxu0 %v4921_v3 }
0x1517   :  { %3712 = vmatpush3.msra.mxu1 %v4921_v3  ;;  %3724 = vmatpush3.msra.mxu0 %v4921_v3 }
0x1518   :  { %3849 = vmatprep.subr.bf16.mxu1 %v5006_v63  ;;  %3857 = vmatprep.subr.bf16.mxu0 %v5006_v63 }
0x1519   :  { %v3703_v32 = vpop.f32.mrb[22].mxu1 }
0x151a   :  { %v2753_v29 = vadd.f32 %v3703_v32, %v2674_v13  ;;  %v2747_v58 = vpop.f32.mrb[23].mxu1 }
0x151b   :  { %v2748_v20 = vadd.f32 %v2747_v58, %v2674_v13 }
0x151c   :  { %3039 = vrot.lane.b32.xlu0 %v2753_v29, %s4063_s24 }
0x151d   :  { %3037 = vrot.lane.b32.xlu1 %v2748_v20, %s4063_s24  ;;  %3713 = vmatprep.mubr.msk.f32.mxu1 %vm128_vm1, %v2748_v20 }
0x151e   :  { %3714 = vmatmul.mubr.msk.f32.vlgmr.msra.gmra.mrb[26].mxu1 %vm128_vm1, %v2753_v29 }
0x151f   :  { %3720 = vmatprep.mubr.msk.f32.mxu1 %vm4075_vm12, %v5007_v55 }
0x1520   :  { %2767 = vperm.xlu0 %3960, %v2759_v8  }
0x1521   :  { %2762 = vperm.xlu1 %3958, %v2758_v49  }
0x1525   :  { %3303 = vperm.xlu1 %3958, %v3300_v33  }
0x1526   :  { %v4944_v30 = vpop.f32.mrb[24].mxu1 }
0x1527   :  { %v2842_v9 = vpop.f32.mrb[25].mxu1 }
0x158e   :  { %v3040_v45 = vpop.permute.xlu0 %3039 }
0x158f   :  { %v3038_v52 = vpop.permute.xlu1 %3037 }
0x1590   :  { %3725 = vmatprep.mubr.msk.f32.mxu0 %vm128_vm1, %v3038_v52 }
0x1591   :  { %3726 = vmatmul.mubr.msk.f32.vlgmr.msra.gmra.mrb[30].mxu0 %vm128_vm1, %v3040_v45 }
0x1592   :  { %3739 = vmatprep.mubr.msk.f32.mxu0 %vm4075_vm12, %v5007_v55 }
0x15a0   :  { %v2763_v28 = vpop.permute.xlu1 %2762 }
0x15a1   :  { %v2843_v11 = vadd.f32 %v2842_v9, %v2763_v28 }
0x15f1   :  { %v3715_v24 = vpop.f32.mrb[26].mxu1 }
0x15f2   :  { %v2933_v42 = vmul.f32 0.35355338, %v3715_v24  ;;  %v2923_v19 = vpop.f32.mrb[27].mxu1 }
0x15f3   :  { %v2932_v15 = vmul.f32 0.35355338, %v2923_v19 }
0x15f4   :  { %v2935_v41 = vadd.f32 %v4061_v18, %v2933_v42 }
0x15f5   :  { %v2934_v4 = vadd.f32 %v4062_v44, %v2932_v15 }
0x15f6   :  { %v2936_v37 = vsel %vm216_vm2, %v2935_v41, -inf }
0x15f7   :  { %v2937_v56 = vmax.f32 %v2934_v4, %v2936_v37 }
0x15f9   :  { %v2938_v61 = vrot.slane %v2937_v56, 4 }
0x15fb   :  { %v2939_v25 = vmax.f32 %v2937_v56, %v2938_v61 }
0x15fd   :  { %v2940_v31 = vrot.slane %v2939_v25, 2 }
0x15ff   :  { %v2941_v62 = vmax.f32 %v2939_v25, %v2940_v31 }
0x1601   :  { %v2942_v57 = vrot.slane %v2941_v62, 1 }
0x1603   :  { %v2943_v36 = vmax.f32 %v2941_v62, %v2942_v57  ;;  %v3225_v57 = vld [vmem:[%s4983_s3 + $0x148] sm:$0xff] }
0x1605   :  { %v2944_v16 = vsub.f32 %v2934_v4, %v2943_v36  ;;  %v2945_v50 = vsub.f32 %v2935_v41, %v2943_v36 }
0x1607   :  { %v2946_v0 = vmul.f32 1.442695, %v2944_v16  ;;  %v2948_v40 = vmul.f32 1.442695, %v2945_v50 }
0x1609   :  { %4047 = vpow2.f32 %v2946_v0  ;;  %v3304_v0 = vpop.permute.xlu1 %3303 }
0x160a   :  { %4049 = vpow2.f32 %v2948_v40 }
0x1613   :  { %v4048_v1 = vpop.eup %4047 }
0x1614   :  { %v4050_v12 = vpop.eup %4049 }
0x1615   :  { %v2950_v27 = vsel %vm216_vm2, %v4050_v12, 0.0 }
0x1616   :  { %v2951_v46 = vadd.f32 %v4048_v1, %v2950_v27 }
0x1618   :  { %v2952_v23 = vrot.slane %v2951_v46, 4 }
0x161a   :  { %v2953_v59 = vadd.f32 %v2952_v23, %v2951_v46 }
0x161c   :  { %v2954_v10 = vrot.slane %v2953_v59, 2 }
0x161e   :  { %v2955_v2 = vadd.f32 %v2954_v10, %v2953_v59 }
0x1620   :  { %v2956_v34 = vrot.slane %v2955_v2, 1 }
0x1622   :  { %v2957_v53 = vadd.f32 %v2956_v34, %v2955_v2 }
0x1624   :  { %4051 = vrcp.f32 %v2957_v53 }
0x162e   :  { %v4052_v43 = vpop.eup %4051 }
0x162f   :  { %v2959_v48 = vmul.f32 %v4052_v43, %v4048_v1  ;;  %v2960_v35 = vmul.f32 %v4052_v43, %v4050_v12 }
0x1631   :  { %v3850_v60 = vpack.c.bf16 %v2960_v35, %v2959_v48 }
0x1633   :  { %3852 = vmatpush3.bf16.msk.msra.mxu1 %vm4302_vm7, %v3850_v60 }
0x1634   :  { %3853 = vmatprep.subr.bf16.mxu1 %v5006_v63 }
0x1636   :  { %3721 = vmatmul.mubr.msk.f32.vlgmr.msra.gmra.mrb[28].mxu1 %vm815_vm9, %v2843_v11 }
0x1637   :  { %3732 = vmatprep.mubr.msk.f32.mxu1 %vm4075_vm12, %v5007_v55 }
0x1664   :  { %v3727_v5 = vpop.f32.mrb[30].mxu0 }
0x1665   :  { %v3121_v39 = vmul.f32 0.35355338, %v3727_v5  ;;  %v3111_v17 = vpop.f32.mrb[31].mxu0 }
0x1666   :  { %v3120_v22 = vmul.f32 0.35355338, %v3111_v17 }
0x1667   :  { %v3123_v47 = vadd.f32 %v4061_v18, %v3121_v39 }
0x1668   :  { %v3122_v7 = vadd.f32 %v4062_v44, %v3120_v22  ;;  %v2768_v44 = vpop.permute.xlu0 %2767 }
0x1669   :  { %v3124_v51 = vsel %vm216_vm2, %v3123_v47, -inf  ;;  %v2848_v37 = vadd.f32 %v4944_v30, %v2768_v44 }
0x166a   :  { %v3125_v14 = vmax.f32 %v3122_v7, %v3124_v51 }
0x166c   :  { %v3126_v21 = vrot.slane %v3125_v14, 4 }
0x166e   :  { %v3127_v6 = vmax.f32 %v3125_v14, %v3126_v21 }
0x1670   :  { %v3128_v54 = vrot.slane %v3127_v6, 2 }
0x1672   :  { %v3129_v26 = vmax.f32 %v3127_v6, %v3128_v54 }
0x1674   :  { %v3130_v13 = vrot.slane %v3129_v26, 1 }
0x1676   :  { %v3131_v63 = vmax.f32 %v3129_v26, %v3130_v13 }
0x1678   :  { %v3132_v32 = vsub.f32 %v3122_v7, %v3131_v63  ;;  %v3133_v29 = vsub.f32 %v3123_v47, %v3131_v63 }
0x167a   :  { %v3134_v58 = vmul.f32 1.442695, %v3132_v32  ;;  %v3136_v20 = vmul.f32 1.442695, %v3133_v29 }
0x167c   :  { %4053 = vpow2.f32 %v3134_v58 }
0x167d   :  { %4055 = vpow2.f32 %v3136_v20 }
0x1686   :  { %v4054_v8 = vpop.eup %4053 }
0x1687   :  { %v4056_v49 = vpop.eup %4055 }
0x1688   :  { %v3138_v55 = vsel %vm216_vm2, %v4056_v49, 0.0 }
0x1689   :  { %v3139_v33 = vadd.f32 %v4054_v8, %v3138_v55 }
0x168b   :  { %v3140_v9 = vrot.slane %v3139_v33, 4 }
0x168d   :  { %v3141_v52 = vadd.f32 %v3140_v9, %v3139_v33 }
0x168f   :  { %v3142_v45 = vrot.slane %v3141_v52, 2 }
0x1691   :  { %v3143_v24 = vadd.f32 %v3142_v45, %v3141_v52 }
0x1693   :  { %v3144_v42 = vrot.slane %v3143_v24, 1 }
0x1695   :  { %v3145_v19 = vadd.f32 %v3144_v42, %v3143_v24 }
0x1697   :  { %4057 = vrcp.f32 %v3145_v19 }
0x16a1   :  { %v4058_v15 = vpop.eup %4057 }
0x16a2   :  { %v3147_v18 = vmul.f32 %v4058_v15, %v4054_v8  ;;  %v3148_v41 = vmul.f32 %v4058_v15, %v4056_v49 }
0x16a4   :  { %v3854_v4 = vpack.c.bf16 %v3148_v41, %v3147_v18 }
0x16a6   :  { %3856 = vmatpush3.bf16.msk.msra.mxu1 %vm4302_vm7, %v3854_v4 }
0x16a9   :  { %3733 = vmatmul.mubr.msk.f32.vlgmr.msra.gmra.mrb[30].mxu1 %vm815_vm9, %v2848_v37 }
0x1709   :  { %v3033_v56 = vpop.f32.mrb[28].mxu1 }
0x170a   :  { %v3722_v61 = vpop.f32.mrb[29].mxu1 }
0x177c   :  { %v3221_v25 = vpop.f32.mrb[30].mxu1 }
0x177d   :  { %v3858_v31 = vpack.c.bf16 %v3221_v25, %v3033_v56  ;;  %v3734_v62 = vpop.f32.mrb[31].mxu1 }
0x177f   :  { %3859 = vmatpush3.bf16.msra.mxu0 %v3858_v31 }
0x1782   :  { %3740 = vmatmul.mubr.msk.f32.vlgmr.msra.gmra.mrb[32].mxu0 %vm504_vm3, %v3225_v57 }
0x1855   :  { %v3295_v36 = vpop.f32.mrb[32].mxu0 }
0x1856   :  { %v3299_v16 = vadd.f32 %v3295_v36, %v4921_v3  ;;  %v3741_v50 = vpop.f32.mrb[33].mxu0 }
0x1858   :  { %v3306_v30 = vadd.f32 %v3304_v0, %v3299_v16 }
0x185a   :  { %3307 = vst [vmem:[%s4986_s7] sm:$0xff] %v3306_v30 }

</bundles_post_ra>
